<compile_context>
chip_gen: v7x
topology: tpu7x:2x2x1
jax: 0.10.0
libtpu: 0.0.40
codegen_flags: <defaults>
</compile_context>

<pallas_src>
import numpy as np
import jax
import jax.numpy as jnp
from jax.experimental import pallas as pl
from jax.experimental.pallas import tpu as pltpu

# Problem sizes (inputSize must be 1 because of .view(-1, 1, 1))
T = 8          # sequence length (numel of the input tensor)
H = 32         # lstmLayerSize
L = 2          # noLSTMLayers (kernel wavefront is specialized to 2 layers)
O = 4          # outputSize
IN = 1         # inputSize
G = 4 * H      # gates width = 128 (one full lane vector)

# Row layout of the packed weight slab (sublane offsets of the big blocks are 8-aligned
# so the static ref slices map cleanly onto (8,128) tiles).
ROW_WIH0 = 0                   # (1, 4H)  layer-0 input->gates row (input_size == 1)
ROW_B0   = 1                   # (1, 4H)  layer-0 combined bias
ROW_B1   = 2                   # (1, 4H)  layer-1 combined bias
ROW_BOUT = 3                   # (1, 4H)  output bias in lanes [:O]
ROW_WHH0 = 8                   # (H, 4H)  layer-0 hidden->gates (transposed)
ROW_W1   = ROW_WHH0 + H        # (2H,4H)  layer-1 fused [wih1^T ; whh1^T]
ROW_WOUT = ROW_W1 + 2 * H      # (H, 4H)  output Linear weight^T in lanes [:O]
SLAB_ROWS = ROW_WOUT + H       # 136


def simple_rnn_kernel(x_ref, w_ref, out_ref):
    """x_ref:   (T, 1)          scalar input sequence as a column
       w_ref:   (SLAB_ROWS, 4H) packed weights/biases, PyTorch gate order (i, f, g, o),
                                g-gate columns pre-scaled by 2 (tanh via sigmoid)
       out_ref: (1, O)
    """
    # --- unpack the weight slab (static, mostly 8-aligned sublane slices) -------------
    wih0 = w_ref[ROW_WIH0:ROW_WIH0 + 1, :]          # (1, 4H)
    b0   = w_ref[ROW_B0:ROW_B0 + 1, :]              # (1, 4H)
    b1   = w_ref[ROW_B1:ROW_B1 + 1, :]              # (1, 4H)
    bout = w_ref[ROW_BOUT:ROW_BOUT + 1, :]          # (1, 4H), lanes [:O] meaningful
    whh0 = w_ref[ROW_WHH0:ROW_WHH0 + H, :]          # (H, 4H)
    w1   = w_ref[ROW_W1:ROW_W1 + 2 * H, :]          # (2H, 4H)
    wout = w_ref[ROW_WOUT:ROW_WOUT + H, :]          # (H, 4H), lanes [:O] meaningful

    # --- layer-0 input contribution + bias, hoisted as one VPU broadcast --------------
    x = x_ref[...]                                  # (T, 1)
    gx0 = x * wih0 + b0                             # (T, 4H), single vreg

    h0 = jnp.zeros((1, H), jnp.float32)
    c0 = jnp.zeros((1, H), jnp.float32)
    h1 = jnp.zeros((1, H), jnp.float32)
    c1 = jnp.zeros((1, H), jnp.float32)

    def cell(gates, c):
        # PyTorch gate order (i, f, g, o); g columns were pre-scaled by 2 offline,
        # so a single sigmoid over all 4H lanes covers every gate:
        #   tanh(z) == 2*sigmoid(2z) - 1  (VPU fixup rides a slack slot).
        sg = jax.nn.sigmoid(gates)                  # one EUP push over (1, 4H)
        i_g = sg[:, 0 * H:1 * H]
        f_g = sg[:, 1 * H:2 * H]
        g_g = 2.0 * sg[:, 2 * H:3 * H] - 1.0
        o_g = sg[:, 3 * H:4 * H]
        c_new = f_g * c + i_g * g_g
        h_new = o_g * jnp.tanh(c_new)
        return h_new, c_new

    # --- wavefront: super-step s runs layer-1 time (s-1) and layer-0 time s -----------
    # Both read h0[s-1]; they are mutually independent, so the scheduler overlaps the
    # MXU/EUP latency of one with the VPU tail of the other.  Critical path ~ T+1 steps.
    for step in range(T + 1):
        h0_in = h0                                  # layer-0 output at time step-1
        if step >= 1:                               # layer-1, time step-1
            hcat = jnp.concatenate([h0_in, h1], axis=1)                   # (1, 2H)
            gates1 = jnp.dot(hcat, w1, preferred_element_type=jnp.float32) + b1
            h1, c1 = cell(gates1, c1)
        if step < T:                                # layer-0, time step
            gates0 = gx0[step:step + 1, :] + jnp.dot(
                h0_in, whh0, preferred_element_type=jnp.float32)
            h0, c0 = cell(gates0, c0)

    # --- final Linear on the last layer's last hidden state ---------------------------
    out_full = jnp.dot(h1, wout, preferred_element_type=jnp.float32) + bout   # (1, 4H)
    out_ref[...] = out_full[:, :O]


@jax.jit
def simple_rnn_forward(x, w_slab):
    x_col = x.reshape(T, 1).astype(jnp.float32)     # cheap reshape, no scatter
    vmem = pl.BlockSpec(memory_space=pltpu.MemorySpace.VMEM)
    out = pl.pallas_call(
        simple_rnn_kernel,
        out_shape=jax.ShapeDtypeStruct((1, O), jnp.float32),
        in_specs=[vmem, vmem],
        out_specs=vmem,
    )(x_col, w_slab)
    return out[0]                                   # shape (O,), same as PyTorch forward


def make_params(key):
    """Deterministic PyTorch-style init: U(-1/sqrt(H), 1/sqrt(H)).  Returns the packed
    VMEM slab for the kernel and the raw parameter lists for the pure-JAX reference."""
    bound = 1.0 / np.sqrt(H)
    keys = jax.random.split(key, 4 * L + 2)
    wih_list, whh_list, bih_list, bhh_list = [], [], [], []
    for l in range(L):
        in_sz = IN if l == 0 else H
        wih_list.append(jax.random.uniform(keys[4 * l + 0], (4 * H, in_sz),
                                           jnp.float32, -bound, bound))
        whh_list.append(jax.random.uniform(keys[4 * l + 1], (4 * H, H),
                                           jnp.float32, -bound, bound))
        bih_list.append(jax.random.uniform(keys[4 * l + 2], (4 * H,),
                                           jnp.float32, -bound, bound))
        bhh_list.append(jax.random.uniform(keys[4 * l + 3], (4 * H,),
                                           jnp.float32, -bound, bound))
    wout = jax.random.uniform(keys[-2], (O, H), jnp.float32, -bound, bound)
    bout = jax.random.uniform(keys[-1], (O,), jnp.float32, -bound, bound)

    # g-gate (rows 2H:3H in PyTorch orientation) pre-scaled by 2 so the kernel can use
    # a single full-row sigmoid and recover tanh(z) as 2*sigmoid(2z)-1.
    gscale = jnp.ones((4 * H,), jnp.float32).at[2 * H:3 * H].set(2.0)

    slab = jnp.zeros((SLAB_ROWS, G), jnp.float32)
    slab = slab.at[ROW_WIH0, :].set(wih_list[0][:, 0] * gscale)
    slab = slab.at[ROW_B0, :].set((bih_list[0] + bhh_list[0]) * gscale)
    slab = slab.at[ROW_B1, :].set((bih_list[1] + bhh_list[1]) * gscale)
    slab = slab.at[ROW_BOUT, :O].set(bout)
    slab = slab.at[ROW_WHH0:ROW_WHH0 + H, :].set((whh_list[0] * gscale[:, None]).T)
    slab = slab.at[ROW_W1:ROW_W1 + H, :].set((wih_list[1] * gscale[:, None]).T)
    slab = slab.at[ROW_W1 + H:ROW_W1 + 2 * H, :].set((whh_list[1] * gscale[:, None]).T)
    slab = slab.at[ROW_WOUT:ROW_WOUT + H, :O].set(wout.T)

    raw = (wih_list, whh_list, bih_list, bhh_list, wout, bout)
    return slab, raw


def reference_forward(x, raw):
    """Pure-JAX reference mirroring nn.LSTM + nn.Linear (original i,f,g,o gate order,
    standard tanh -- no kernel-side tricks)."""
    wih_list, whh_list, bih_list, bhh_list, wout, bout = raw
    layer_in = x.reshape(-1, 1).astype(jnp.float32)                 # (T, in)
    for l in range(L):
        wih, whh = wih_list[l], whh_list[l]
        b = bih_list[l] + bhh_list[l]
        h = jnp.zeros((H,), jnp.float32)
        c = jnp.zeros((H,), jnp.float32)
        outs = []
        for t in range(T):
            gates = wih @ layer_in[t] + whh @ h + b
            i_g = jax.nn.sigmoid(gates[0 * H:1 * H])
            f_g = jax.nn.sigmoid(gates[1 * H:2 * H])
            g_g = jnp.tanh(gates[2 * H:3 * H])
            o_g = jax.nn.sigmoid(gates[3 * H:4 * H])
            c = f_g * c + i_g * g_g
            h = o_g * jnp.tanh(c)
            outs.append(h)
        layer_in = jnp.stack(outs, axis=0)                          # (T, H)
    return layer_in[-1] @ wout.T + bout                             # (O,)


if __name__ == "__main__":
    key = jax.random.PRNGKey(0)
    pkey, xkey = jax.random.split(key)
    w_slab, raw = make_params(pkey)
    x = jax.random.normal(xkey, (T,), jnp.float32)   # scalar sequence (any shape flattens the same)

    out = simple_rnn_forward(x, w_slab)
    out = jax.block_until_ready(out)

    ref = reference_forward(x, raw)
    # tanh(z) == 2*sigmoid(2z)-1 is exact in reals; in f32 it can differ by a few ulps per
    # step, so the tolerance is 1e-4 (still tight for an 8-step LSTM forward).
    np.testing.assert_allclose(np.asarray(out), np.asarray(ref), rtol=1e-4, atol=1e-4)
    print("KERNEL_OK")
</pallas_src>

<mosaic_0001>
module attributes {stable_mosaic.version = 11 : i64} {
  func.func @simple_rnn_kernel(%arg0: memref<8x1xf32, #tpu.memory_space<vmem>>, %arg1: memref<136x128xf32, #tpu.memory_space<vmem>>, %arg2: memref<1x4xf32, #tpu.memory_space<vmem>>) attributes {dimension_semantics = [], scalar_prefetch = 0 : i64, scratch_operands = 0 : i64, tpu.core_type = #tpu.core_type<tc>} {
    %c0 = arith.constant 0 : index
    %c0_0 = arith.constant 0 : index
    %0 = vector.load %arg1[%c0, %c0_0] : memref<136x128xf32, #tpu.memory_space<vmem>>, vector<1x128xf32>
    %c1 = arith.constant 1 : index
    %c0_1 = arith.constant 0 : index
    %1 = vector.load %arg1[%c1, %c0_1] : memref<136x128xf32, #tpu.memory_space<vmem>>, vector<1x128xf32>
    %c2 = arith.constant 2 : index
    %c0_2 = arith.constant 0 : index
    %2 = vector.load %arg1[%c2, %c0_2] : memref<136x128xf32, #tpu.memory_space<vmem>>, vector<1x128xf32>
    %c3 = arith.constant 3 : index
    %c0_3 = arith.constant 0 : index
    %3 = vector.load %arg1[%c3, %c0_3] : memref<136x128xf32, #tpu.memory_space<vmem>>, vector<1x128xf32>
    %c8 = arith.constant 8 : index
    %c0_4 = arith.constant 0 : index
    %4 = vector.load %arg1[%c8, %c0_4] : memref<136x128xf32, #tpu.memory_space<vmem>>, vector<32x128xf32>
    %c40 = arith.constant 40 : index
    %c0_5 = arith.constant 0 : index
    %5 = vector.load %arg1[%c40, %c0_5] : memref<136x128xf32, #tpu.memory_space<vmem>>, vector<64x128xf32>
    %c104 = arith.constant 104 : index
    %c0_6 = arith.constant 0 : index
    %6 = vector.load %arg1[%c104, %c0_6] : memref<136x128xf32, #tpu.memory_space<vmem>>, vector<32x128xf32>
    %c0_7 = arith.constant 0 : index
    %c0_8 = arith.constant 0 : index
    %7 = vector.load %arg0[%c0_7, %c0_8] : memref<8x1xf32, #tpu.memory_space<vmem>>, vector<8x1xf32>
    %8 = vector.broadcast %7 : vector<8x1xf32> to vector<8x128xf32>
    %9 = vector.broadcast %0 : vector<1x128xf32> to vector<8x128xf32>
    %10 = arith.mulf %8, %9 : vector<8x128xf32>
    %11 = vector.broadcast %1 : vector<1x128xf32> to vector<8x128xf32>
    %12 = arith.addf %10, %11 : vector<8x128xf32>
    %cst = arith.constant 0.000000e+00 : f32
    %13 = vector.broadcast %cst : f32 to vector<1x32xf32>
    %cst_9 = arith.constant 0.000000e+00 : f32
    %14 = vector.broadcast %cst_9 : f32 to vector<1x32xf32>
    %cst_10 = arith.constant 0.000000e+00 : f32
    %15 = vector.broadcast %cst_10 : f32 to vector<1x32xf32>
    %cst_11 = arith.constant 0.000000e+00 : f32
    %16 = vector.broadcast %cst_11 : f32 to vector<1x32xf32>
    %17 = vector.extract_strided_slice %12 {offsets = [0, 0], sizes = [1, 128], strides = [1, 1]} : vector<8x128xf32> to vector<1x128xf32>
    %cst_12 = arith.constant dense<0.000000e+00> : vector<1x128xf32>
    %18 = tpu.matmul %13, %4, %cst_12 {dimension_numbers = #tpu.dot_dimension_numbers<[1], [0], [0], [1], [0, 0, 1, 1], [], []>} : vector<1x32xf32>, vector<32x128xf32>, vector<1x128xf32> -> vector<1x128xf32>
    %19 = arith.addf %17, %18 : vector<1x128xf32>
    %20 = arith.negf %19 : vector<1x128xf32>
    %21 = math.exp %20 : vector<1x128xf32>
    %cst_13 = arith.constant 1.000000e+00 : f32
    %22 = vector.broadcast %cst_13 : f32 to vector<1x128xf32>
    %23 = arith.addf %22, %21 : vector<1x128xf32>
    %24 = arith.divf %22, %23 : vector<1x128xf32>
    %25 = vector.extract_strided_slice %24 {offsets = [0, 0], sizes = [1, 32], strides = [1, 1]} : vector<1x128xf32> to vector<1x32xf32>
    %26 = vector.extract_strided_slice %24 {offsets = [0, 32], sizes = [1, 32], strides = [1, 1]} : vector<1x128xf32> to vector<1x32xf32>
    %27 = vector.extract_strided_slice %24 {offsets = [0, 64], sizes = [1, 32], strides = [1, 1]} : vector<1x128xf32> to vector<1x32xf32>
    %cst_14 = arith.constant 2.000000e+00 : f32
    %28 = vector.broadcast %cst_14 : f32 to vector<1x32xf32>
    %29 = arith.mulf %28, %27 : vector<1x32xf32>
    %cst_15 = arith.constant 1.000000e+00 : f32
    %30 = vector.broadcast %cst_15 : f32 to vector<1x32xf32>
    %31 = arith.subf %29, %30 : vector<1x32xf32>
    %32 = vector.extract_strided_slice %24 {offsets = [0, 96], sizes = [1, 32], strides = [1, 1]} : vector<1x128xf32> to vector<1x32xf32>
    %33 = arith.mulf %26, %14 : vector<1x32xf32>
    %34 = arith.mulf %25, %31 : vector<1x32xf32>
    %35 = arith.addf %33, %34 : vector<1x32xf32>
    %36 = math.tanh %35 : vector<1x32xf32>
    %37 = arith.mulf %32, %36 : vector<1x32xf32>
    %38 = tpu.concatenate %37, %15 in 1 : vector<1x32xf32>, vector<1x32xf32> -> vector<1x64xf32>
    %cst_16 = arith.constant dense<0.000000e+00> : vector<1x128xf32>
    %39 = tpu.matmul %38, %5, %cst_16 {dimension_numbers = #tpu.dot_dimension_numbers<[1], [0], [0], [1], [0, 0, 1, 1], [], []>} : vector<1x64xf32>, vector<64x128xf32>, vector<1x128xf32> -> vector<1x128xf32>
    %40 = arith.addf %39, %2 : vector<1x128xf32>
    %41 = arith.negf %40 : vector<1x128xf32>
    %42 = math.exp %41 : vector<1x128xf32>
    %cst_17 = arith.constant 1.000000e+00 : f32
    %43 = vector.broadcast %cst_17 : f32 to vector<1x128xf32>
    %44 = arith.addf %43, %42 : vector<1x128xf32>
    %45 = arith.divf %43, %44 : vector<1x128xf32>
    %46 = vector.extract_strided_slice %45 {offsets = [0, 0], sizes = [1, 32], strides = [1, 1]} : vector<1x128xf32> to vector<1x32xf32>
    %47 = vector.extract_strided_slice %45 {offsets = [0, 32], sizes = [1, 32], strides = [1, 1]} : vector<1x128xf32> to vector<1x32xf32>
    %48 = vector.extract_strided_slice %45 {offsets = [0, 64], sizes = [1, 32], strides = [1, 1]} : vector<1x128xf32> to vector<1x32xf32>
    %cst_18 = arith.constant 2.000000e+00 : f32
    %49 = vector.broadcast %cst_18 : f32 to vector<1x32xf32>
    %50 = arith.mulf %49, %48 : vector<1x32xf32>
    %cst_19 = arith.constant 1.000000e+00 : f32
    %51 = vector.broadcast %cst_19 : f32 to vector<1x32xf32>
    %52 = arith.subf %50, %51 : vector<1x32xf32>
    %53 = vector.extract_strided_slice %45 {offsets = [0, 96], sizes = [1, 32], strides = [1, 1]} : vector<1x128xf32> to vector<1x32xf32>
    %54 = arith.mulf %47, %16 : vector<1x32xf32>
    %55 = arith.mulf %46, %52 : vector<1x32xf32>
    %56 = arith.addf %54, %55 : vector<1x32xf32>
    %57 = math.tanh %56 : vector<1x32xf32>
    %58 = arith.mulf %53, %57 : vector<1x32xf32>
    %59 = vector.extract_strided_slice %12 {offsets = [1, 0], sizes = [1, 128], strides = [1, 1]} : vector<8x128xf32> to vector<1x128xf32>
    %cst_20 = arith.constant dense<0.000000e+00> : vector<1x128xf32>
    %60 = tpu.matmul %37, %4, %cst_20 {dimension_numbers = #tpu.dot_dimension_numbers<[1], [0], [0], [1], [0, 0, 1, 1], [], []>} : vector<1x32xf32>, vector<32x128xf32>, vector<1x128xf32> -> vector<1x128xf32>
    %61 = arith.addf %59, %60 : vector<1x128xf32>
    %62 = arith.negf %61 : vector<1x128xf32>
    %63 = math.exp %62 : vector<1x128xf32>
    %cst_21 = arith.constant 1.000000e+00 : f32
    %64 = vector.broadcast %cst_21 : f32 to vector<1x128xf32>
    %65 = arith.addf %64, %63 : vector<1x128xf32>
    %66 = arith.divf %64, %65 : vector<1x128xf32>
    %67 = vector.extract_strided_slice %66 {offsets = [0, 0], sizes = [1, 32], strides = [1, 1]} : vector<1x128xf32> to vector<1x32xf32>
    %68 = vector.extract_strided_slice %66 {offsets = [0, 32], sizes = [1, 32], strides = [1, 1]} : vector<1x128xf32> to vector<1x32xf32>
    %69 = vector.extract_strided_slice %66 {offsets = [0, 64], sizes = [1, 32], strides = [1, 1]} : vector<1x128xf32> to vector<1x32xf32>
    %cst_22 = arith.constant 2.000000e+00 : f32
    %70 = vector.broadcast %cst_22 : f32 to vector<1x32xf32>
    %71 = arith.mulf %70, %69 : vector<1x32xf32>
    %cst_23 = arith.constant 1.000000e+00 : f32
    %72 = vector.broadcast %cst_23 : f32 to vector<1x32xf32>
    %73 = arith.subf %71, %72 : vector<1x32xf32>
    %74 = vector.extract_strided_slice %66 {offsets = [0, 96], sizes = [1, 32], strides = [1, 1]} : vector<1x128xf32> to vector<1x32xf32>
    %75 = arith.mulf %68, %35 : vector<1x32xf32>
    %76 = arith.mulf %67, %73 : vector<1x32xf32>
    %77 = arith.addf %75, %76 : vector<1x32xf32>
    %78 = math.tanh %77 : vector<1x32xf32>
    %79 = arith.mulf %74, %78 : vector<1x32xf32>
    %80 = tpu.concatenate %79, %58 in 1 : vector<1x32xf32>, vector<1x32xf32> -> vector<1x64xf32>
    %cst_24 = arith.constant dense<0.000000e+00> : vector<1x128xf32>
    %81 = tpu.matmul %80, %5, %cst_24 {dimension_numbers = #tpu.dot_dimension_numbers<[1], [0], [0], [1], [0, 0, 1, 1], [], []>} : vector<1x64xf32>, vector<64x128xf32>, vector<1x128xf32> -> vector<1x128xf32>
    %82 = arith.addf %81, %2 : vector<1x128xf32>
    %83 = arith.negf %82 : vector<1x128xf32>
    %84 = math.exp %83 : vector<1x128xf32>
    %cst_25 = arith.constant 1.000000e+00 : f32
    %85 = vector.broadcast %cst_25 : f32 to vector<1x128xf32>
    %86 = arith.addf %85, %84 : vector<1x128xf32>
    %87 = arith.divf %85, %86 : vector<1x128xf32>
    %88 = vector.extract_strided_slice %87 {offsets = [0, 0], sizes = [1, 32], strides = [1, 1]} : vector<1x128xf32> to vector<1x32xf32>
    %89 = vector.extract_strided_slice %87 {offsets = [0, 32], sizes = [1, 32], strides = [1, 1]} : vector<1x128xf32> to vector<1x32xf32>
    %90 = vector.extract_strided_slice %87 {offsets = [0, 64], sizes = [1, 32], strides = [1, 1]} : vector<1x128xf32> to vector<1x32xf32>
    %cst_26 = arith.constant 2.000000e+00 : f32
    %91 = vector.broadcast %cst_26 : f32 to vector<1x32xf32>
    %92 = arith.mulf %91, %90 : vector<1x32xf32>
    %cst_27 = arith.constant 1.000000e+00 : f32
    %93 = vector.broadcast %cst_27 : f32 to vector<1x32xf32>
    %94 = arith.subf %92, %93 : vector<1x32xf32>
    %95 = vector.extract_strided_slice %87 {offsets = [0, 96], sizes = [1, 32], strides = [1, 1]} : vector<1x128xf32> to vector<1x32xf32>
    %96 = arith.mulf %89, %56 : vector<1x32xf32>
    %97 = arith.mulf %88, %94 : vector<1x32xf32>
    %98 = arith.addf %96, %97 : vector<1x32xf32>
    %99 = math.tanh %98 : vector<1x32xf32>
    %100 = arith.mulf %95, %99 : vector<1x32xf32>
    %101 = vector.extract_strided_slice %12 {offsets = [2, 0], sizes = [1, 128], strides = [1, 1]} : vector<8x128xf32> to vector<1x128xf32>
    %cst_28 = arith.constant dense<0.000000e+00> : vector<1x128xf32>
    %102 = tpu.matmul %79, %4, %cst_28 {dimension_numbers = #tpu.dot_dimension_numbers<[1], [0], [0], [1], [0, 0, 1, 1], [], []>} : vector<1x32xf32>, vector<32x128xf32>, vector<1x128xf32> -> vector<1x128xf32>
    %103 = arith.addf %101, %102 : vector<1x128xf32>
    %104 = arith.negf %103 : vector<1x128xf32>
    %105 = math.exp %104 : vector<1x128xf32>
    %cst_29 = arith.constant 1.000000e+00 : f32
    %106 = vector.broadcast %cst_29 : f32 to vector<1x128xf32>
    %107 = arith.addf %106, %105 : vector<1x128xf32>
    %108 = arith.divf %106, %107 : vector<1x128xf32>
    %109 = vector.extract_strided_slice %108 {offsets = [0, 0], sizes = [1, 32], strides = [1, 1]} : vector<1x128xf32> to vector<1x32xf32>
    %110 = vector.extract_strided_slice %108 {offsets = [0, 32], sizes = [1, 32], strides = [1, 1]} : vector<1x128xf32> to vector<1x32xf32>
    %111 = vector.extract_strided_slice %108 {offsets = [0, 64], sizes = [1, 32], strides = [1, 1]} : vector<1x128xf32> to vector<1x32xf32>
    %cst_30 = arith.constant 2.000000e+00 : f32
    %112 = vector.broadcast %cst_30 : f32 to vector<1x32xf32>
    %113 = arith.mulf %112, %111 : vector<1x32xf32>
    %cst_31 = arith.constant 1.000000e+00 : f32
    %114 = vector.broadcast %cst_31 : f32 to vector<1x32xf32>
    %115 = arith.subf %113, %114 : vector<1x32xf32>
    %116 = vector.extract_strided_slice %108 {offsets = [0, 96], sizes = [1, 32], strides = [1, 1]} : vector<1x128xf32> to vector<1x32xf32>
    %117 = arith.mulf %110, %77 : vector<1x32xf32>
    %118 = arith.mulf %109, %115 : vector<1x32xf32>
    %119 = arith.addf %117, %118 : vector<1x32xf32>
    %120 = math.tanh %119 : vector<1x32xf32>
    %121 = arith.mulf %116, %120 : vector<1x32xf32>
    %122 = tpu.concatenate %121, %100 in 1 : vector<1x32xf32>, vector<1x32xf32> -> vector<1x64xf32>
    %cst_32 = arith.constant dense<0.000000e+00> : vector<1x128xf32>
    %123 = tpu.matmul %122, %5, %cst_32 {dimension_numbers = #tpu.dot_dimension_numbers<[1], [0], [0], [1], [0, 0, 1, 1], [], []>} : vector<1x64xf32>, vector<64x128xf32>, vector<1x128xf32> -> vector<1x128xf32>
    %124 = arith.addf %123, %2 : vector<1x128xf32>
    %125 = arith.negf %124 : vector<1x128xf32>
    %126 = math.exp %125 : vector<1x128xf32>
    %cst_33 = arith.constant 1.000000e+00 : f32
    %127 = vector.broadcast %cst_33 : f32 to vector<1x128xf32>
    %128 = arith.addf %127, %126 : vector<1x128xf32>
    %129 = arith.divf %127, %128 : vector<1x128xf32>
    %130 = vector.extract_strided_slice %129 {offsets = [0, 0], sizes = [1, 32], strides = [1, 1]} : vector<1x128xf32> to vector<1x32xf32>
    %131 = vector.extract_strided_slice %129 {offsets = [0, 32], sizes = [1, 32], strides = [1, 1]} : vector<1x128xf32> to vector<1x32xf32>
    %132 = vector.extract_strided_slice %129 {offsets = [0, 64], sizes = [1, 32], strides = [1, 1]} : vector<1x128xf32> to vector<1x32xf32>
    %cst_34 = arith.constant 2.000000e+00 : f32
    %133 = vector.broadcast %cst_34 : f32 to vector<1x32xf32>
    %134 = arith.mulf %133, %132 : vector<1x32xf32>
    %cst_35 = arith.constant 1.000000e+00 : f32
    %135 = vector.broadcast %cst_35 : f32 to vector<1x32xf32>
    %136 = arith.subf %134, %135 : vector<1x32xf32>
    %137 = vector.extract_strided_slice %129 {offsets = [0, 96], sizes = [1, 32], strides = [1, 1]} : vector<1x128xf32> to vector<1x32xf32>
    %138 = arith.mulf %131, %98 : vector<1x32xf32>
    %139 = arith.mulf %130, %136 : vector<1x32xf32>
    %140 = arith.addf %138, %139 : vector<1x32xf32>
    %141 = math.tanh %140 : vector<1x32xf32>
    %142 = arith.mulf %137, %141 : vector<1x32xf32>
    %143 = vector.extract_strided_slice %12 {offsets = [3, 0], sizes = [1, 128], strides = [1, 1]} : vector<8x128xf32> to vector<1x128xf32>
    %cst_36 = arith.constant dense<0.000000e+00> : vector<1x128xf32>
    %144 = tpu.matmul %121, %4, %cst_36 {dimension_numbers = #tpu.dot_dimension_numbers<[1], [0], [0], [1], [0, 0, 1, 1], [], []>} : vector<1x32xf32>, vector<32x128xf32>, vector<1x128xf32> -> vector<1x128xf32>
    %145 = arith.addf %143, %144 : vector<1x128xf32>
    %146 = arith.negf %145 : vector<1x128xf32>
    %147 = math.exp %146 : vector<1x128xf32>
    %cst_37 = arith.constant 1.000000e+00 : f32
    %148 = vector.broadcast %cst_37 : f32 to vector<1x128xf32>
    %149 = arith.addf %148, %147 : vector<1x128xf32>
    %150 = arith.divf %148, %149 : vector<1x128xf32>
    %151 = vector.extract_strided_slice %150 {offsets = [0, 0], sizes = [1, 32], strides = [1, 1]} : vector<1x128xf32> to vector<1x32xf32>
    %152 = vector.extract_strided_slice %150 {offsets = [0, 32], sizes = [1, 32], strides = [1, 1]} : vector<1x128xf32> to vector<1x32xf32>
    %153 = vector.extract_strided_slice %150 {offsets = [0, 64], sizes = [1, 32], strides = [1, 1]} : vector<1x128xf32> to vector<1x32xf32>
    %cst_38 = arith.constant 2.000000e+00 : f32
    %154 = vector.broadcast %cst_38 : f32 to vector<1x32xf32>
    %155 = arith.mulf %154, %153 : vector<1x32xf32>
    %cst_39 = arith.constant 1.000000e+00 : f32
    %156 = vector.broadcast %cst_39 : f32 to vector<1x32xf32>
    %157 = arith.subf %155, %156 : vector<1x32xf32>
    %158 = vector.extract_strided_slice %150 {offsets = [0, 96], sizes = [1, 32], strides = [1, 1]} : vector<1x128xf32> to vector<1x32xf32>
    %159 = arith.mulf %152, %119 : vector<1x32xf32>
    %160 = arith.mulf %151, %157 : vector<1x32xf32>
    %161 = arith.addf %159, %160 : vector<1x32xf32>
    %162 = math.tanh %161 : vector<1x32xf32>
    %163 = arith.mulf %158, %162 : vector<1x32xf32>
    %164 = tpu.concatenate %163, %142 in 1 : vector<1x32xf32>, vector<1x32xf32> -> vector<1x64xf32>
    %cst_40 = arith.constant dense<0.000000e+00> : vector<1x128xf32>
    %165 = tpu.matmul %164, %5, %cst_40 {dimension_numbers = #tpu.dot_dimension_numbers<[1], [0], [0], [1], [0, 0, 1, 1], [], []>} : vector<1x64xf32>, vector<64x128xf32>, vector<1x128xf32> -> vector<1x128xf32>
    %166 = arith.addf %165, %2 : vector<1x128xf32>
    %167 = arith.negf %166 : vector<1x128xf32>
    %168 = math.exp %167 : vector<1x128xf32>
    %cst_41 = arith.constant 1.000000e+00 : f32
    %169 = vector.broadcast %cst_41 : f32 to vector<1x128xf32>
    %170 = arith.addf %169, %168 : vector<1x128xf32>
    %171 = arith.divf %169, %170 : vector<1x128xf32>
    %172 = vector.extract_strided_slice %171 {offsets = [0, 0], sizes = [1, 32], strides = [1, 1]} : vector<1x128xf32> to vector<1x32xf32>
    %173 = vector.extract_strided_slice %171 {offsets = [0, 32], sizes = [1, 32], strides = [1, 1]} : vector<1x128xf32> to vector<1x32xf32>
    %174 = vector.extract_strided_slice %171 {offsets = [0, 64], sizes = [1, 32], strides = [1, 1]} : vector<1x128xf32> to vector<1x32xf32>
    %cst_42 = arith.constant 2.000000e+00 : f32
    %175 = vector.broadcast %cst_42 : f32 to vector<1x32xf32>
    %176 = arith.mulf %175, %174 : vector<1x32xf32>
    %cst_43 = arith.constant 1.000000e+00 : f32
    %177 = vector.broadcast %cst_43 : f32 to vector<1x32xf32>
    %178 = arith.subf %176, %177 : vector<1x32xf32>
    %179 = vector.extract_strided_slice %171 {offsets = [0, 96], sizes = [1, 32], strides = [1, 1]} : vector<1x128xf32> to vector<1x32xf32>
    %180 = arith.mulf %173, %140 : vector<1x32xf32>
    %181 = arith.mulf %172, %178 : vector<1x32xf32>
    %182 = arith.addf %180, %181 : vector<1x32xf32>
    %183 = math.tanh %182 : vector<1x32xf32>
    %184 = arith.mulf %179, %183 : vector<1x32xf32>
    %185 = vector.extract_strided_slice %12 {offsets = [4, 0], sizes = [1, 128], strides = [1, 1]} : vector<8x128xf32> to vector<1x128xf32>
    %cst_44 = arith.constant dense<0.000000e+00> : vector<1x128xf32>
    %186 = tpu.matmul %163, %4, %cst_44 {dimension_numbers = #tpu.dot_dimension_numbers<[1], [0], [0], [1], [0, 0, 1, 1], [], []>} : vector<1x32xf32>, vector<32x128xf32>, vector<1x128xf32> -> vector<1x128xf32>
    %187 = arith.addf %185, %186 : vector<1x128xf32>
    %188 = arith.negf %187 : vector<1x128xf32>
    %189 = math.exp %188 : vector<1x128xf32>
    %cst_45 = arith.constant 1.000000e+00 : f32
    %190 = vector.broadcast %cst_45 : f32 to vector<1x128xf32>
    %191 = arith.addf %190, %189 : vector<1x128xf32>
    %192 = arith.divf %190, %191 : vector<1x128xf32>
    %193 = vector.extract_strided_slice %192 {offsets = [0, 0], sizes = [1, 32], strides = [1, 1]} : vector<1x128xf32> to vector<1x32xf32>
    %194 = vector.extract_strided_slice %192 {offsets = [0, 32], sizes = [1, 32], strides = [1, 1]} : vector<1x128xf32> to vector<1x32xf32>
    %195 = vector.extract_strided_slice %192 {offsets = [0, 64], sizes = [1, 32], strides = [1, 1]} : vector<1x128xf32> to vector<1x32xf32>
    %cst_46 = arith.constant 2.000000e+00 : f32
    %196 = vector.broadcast %cst_46 : f32 to vector<1x32xf32>
    %197 = arith.mulf %196, %195 : vector<1x32xf32>
    %cst_47 = arith.constant 1.000000e+00 : f32
    %198 = vector.broadcast %cst_47 : f32 to vector<1x32xf32>
    %199 = arith.subf %197, %198 : vector<1x32xf32>
    %200 = vector.extract_strided_slice %192 {offsets = [0, 96], sizes = [1, 32], strides = [1, 1]} : vector<1x128xf32> to vector<1x32xf32>
    %201 = arith.mulf %194, %161 : vector<1x32xf32>
    %202 = arith.mulf %193, %199 : vector<1x32xf32>
    %203 = arith.addf %201, %202 : vector<1x32xf32>
    %204 = math.tanh %203 : vector<1x32xf32>
    %205 = arith.mulf %200, %204 : vector<1x32xf32>
    %206 = tpu.concatenate %205, %184 in 1 : vector<1x32xf32>, vector<1x32xf32> -> vector<1x64xf32>
    %cst_48 = arith.constant dense<0.000000e+00> : vector<1x128xf32>
    %207 = tpu.matmul %206, %5, %cst_48 {dimension_numbers = #tpu.dot_dimension_numbers<[1], [0], [0], [1], [0, 0, 1, 1], [], []>} : vector<1x64xf32>, vector<64x128xf32>, vector<1x128xf32> -> vector<1x128xf32>
    %208 = arith.addf %207, %2 : vector<1x128xf32>
    %209 = arith.negf %208 : vector<1x128xf32>
    %210 = math.exp %209 : vector<1x128xf32>
    %cst_49 = arith.constant 1.000000e+00 : f32
    %211 = vector.broadcast %cst_49 : f32 to vector<1x128xf32>
    %212 = arith.addf %211, %210 : vector<1x128xf32>
    %213 = arith.divf %211, %212 : vector<1x128xf32>
    %214 = vector.extract_strided_slice %213 {offsets = [0, 0], sizes = [1, 32], strides = [1, 1]} : vector<1x128xf32> to vector<1x32xf32>
    %215 = vector.extract_strided_slice %213 {offsets = [0, 32], sizes = [1, 32], strides = [1, 1]} : vector<1x128xf32> to vector<1x32xf32>
    %216 = vector.extract_strided_slice %213 {offsets = [0, 64], sizes = [1, 32], strides = [1, 1]} : vector<1x128xf32> to vector<1x32xf32>
    %cst_50 = arith.constant 2.000000e+00 : f32
    %217 = vector.broadcast %cst_50 : f32 to vector<1x32xf32>
    %218 = arith.mulf %217, %216 : vector<1x32xf32>
    %cst_51 = arith.constant 1.000000e+00 : f32
    %219 = vector.broadcast %cst_51 : f32 to vector<1x32xf32>
    %220 = arith.subf %218, %219 : vector<1x32xf32>
    %221 = vector.extract_strided_slice %213 {offsets = [0, 96], sizes = [1, 32], strides = [1, 1]} : vector<1x128xf32> to vector<1x32xf32>
    %222 = arith.mulf %215, %182 : vector<1x32xf32>
    %223 = arith.mulf %214, %220 : vector<1x32xf32>
    %224 = arith.addf %222, %223 : vector<1x32xf32>
    %225 = math.tanh %224 : vector<1x32xf32>
    %226 = arith.mulf %221, %225 : vector<1x32xf32>
    %227 = vector.extract_strided_slice %12 {offsets = [5, 0], sizes = [1, 128], strides = [1, 1]} : vector<8x128xf32> to vector<1x128xf32>
    %cst_52 = arith.constant dense<0.000000e+00> : vector<1x128xf32>
    %228 = tpu.matmul %205, %4, %cst_52 {dimension_numbers = #tpu.dot_dimension_numbers<[1], [0], [0], [1], [0, 0, 1, 1], [], []>} : vector<1x32xf32>, vector<32x128xf32>, vector<1x128xf32> -> vector<1x128xf32>
    %229 = arith.addf %227, %228 : vector<1x128xf32>
    %230 = arith.negf %229 : vector<1x128xf32>
    %231 = math.exp %230 : vector<1x128xf32>
    %cst_53 = arith.constant 1.000000e+00 : f32
    %232 = vector.broadcast %cst_53 : f32 to vector<1x128xf32>
    %233 = arith.addf %232, %231 : vector<1x128xf32>
    %234 = arith.divf %232, %233 : vector<1x128xf32>
    %235 = vector.extract_strided_slice %234 {offsets = [0, 0], sizes = [1, 32], strides = [1, 1]} : vector<1x128xf32> to vector<1x32xf32>
    %236 = vector.extract_strided_slice %234 {offsets = [0, 32], sizes = [1, 32], strides = [1, 1]} : vector<1x128xf32> to vector<1x32xf32>
    %237 = vector.extract_strided_slice %234 {offsets = [0, 64], sizes = [1, 32], strides = [1, 1]} : vector<1x128xf32> to vector<1x32xf32>
    %cst_54 = arith.constant 2.000000e+00 : f32
    %238 = vector.broadcast %cst_54 : f32 to vector<1x32xf32>
    %239 = arith.mulf %238, %237 : vector<1x32xf32>
    %cst_55 = arith.constant 1.000000e+00 : f32
    %240 = vector.broadcast %cst_55 : f32 to vector<1x32xf32>
    %241 = arith.subf %239, %240 : vector<1x32xf32>
    %242 = vector.extract_strided_slice %234 {offsets = [0, 96], sizes = [1, 32], strides = [1, 1]} : vector<1x128xf32> to vector<1x32xf32>
    %243 = arith.mulf %236, %203 : vector<1x32xf32>
    %244 = arith.mulf %235, %241 : vector<1x32xf32>
    %245 = arith.addf %243, %244 : vector<1x32xf32>
    %246 = math.tanh %245 : vector<1x32xf32>
    %247 = arith.mulf %242, %246 : vector<1x32xf32>
    %248 = tpu.concatenate %247, %226 in 1 : vector<1x32xf32>, vector<1x32xf32> -> vector<1x64xf32>
    %cst_56 = arith.constant dense<0.000000e+00> : vector<1x128xf32>
    %249 = tpu.matmul %248, %5, %cst_56 {dimension_numbers = #tpu.dot_dimension_numbers<[1], [0], [0], [1], [0, 0, 1, 1], [], []>} : vector<1x64xf32>, vector<64x128xf32>, vector<1x128xf32> -> vector<1x128xf32>
    %250 = arith.addf %249, %2 : vector<1x128xf32>
    %251 = arith.negf %250 : vector<1x128xf32>
    %252 = math.exp %251 : vector<1x128xf32>
    %cst_57 = arith.constant 1.000000e+00 : f32
    %253 = vector.broadcast %cst_57 : f32 to vector<1x128xf32>
    %254 = arith.addf %253, %252 : vector<1x128xf32>
    %255 = arith.divf %253, %254 : vector<1x128xf32>
    %256 = vector.extract_strided_slice %255 {offsets = [0, 0], sizes = [1, 32], strides = [1, 1]} : vector<1x128xf32> to vector<1x32xf32>
    %257 = vector.extract_strided_slice %255 {offsets = [0, 32], sizes = [1, 32], strides = [1, 1]} : vector<1x128xf32> to vector<1x32xf32>
    %258 = vector.extract_strided_slice %255 {offsets = [0, 64], sizes = [1, 32], strides = [1, 1]} : vector<1x128xf32> to vector<1x32xf32>
    %cst_58 = arith.constant 2.000000e+00 : f32
    %259 = vector.broadcast %cst_58 : f32 to vector<1x32xf32>
    %260 = arith.mulf %259, %258 : vector<1x32xf32>
    %cst_59 = arith.constant 1.000000e+00 : f32
    %261 = vector.broadcast %cst_59 : f32 to vector<1x32xf32>
    %262 = arith.subf %260, %261 : vector<1x32xf32>
    %263 = vector.extract_strided_slice %255 {offsets = [0, 96], sizes = [1, 32], strides = [1, 1]} : vector<1x128xf32> to vector<1x32xf32>
    %264 = arith.mulf %257, %224 : vector<1x32xf32>
    %265 = arith.mulf %256, %262 : vector<1x32xf32>
    %266 = arith.addf %264, %265 : vector<1x32xf32>
    %267 = math.tanh %266 : vector<1x32xf32>
    %268 = arith.mulf %263, %267 : vector<1x32xf32>
    %269 = vector.extract_strided_slice %12 {offsets = [6, 0], sizes = [1, 128], strides = [1, 1]} : vector<8x128xf32> to vector<1x128xf32>
    %cst_60 = arith.constant dense<0.000000e+00> : vector<1x128xf32>
    %270 = tpu.matmul %247, %4, %cst_60 {dimension_numbers = #tpu.dot_dimension_numbers<[1], [0], [0], [1], [0, 0, 1, 1], [], []>} : vector<1x32xf32>, vector<32x128xf32>, vector<1x128xf32> -> vector<1x128xf32>
    %271 = arith.addf %269, %270 : vector<1x128xf32>
    %272 = arith.negf %271 : vector<1x128xf32>
    %273 = math.exp %272 : vector<1x128xf32>
    %cst_61 = arith.constant 1.000000e+00 : f32
    %274 = vector.broadcast %cst_61 : f32 to vector<1x128xf32>
    %275 = arith.addf %274, %273 : vector<1x128xf32>
    %276 = arith.divf %274, %275 : vector<1x128xf32>
    %277 = vector.extract_strided_slice %276 {offsets = [0, 0], sizes = [1, 32], strides = [1, 1]} : vector<1x128xf32> to vector<1x32xf32>
    %278 = vector.extract_strided_slice %276 {offsets = [0, 32], sizes = [1, 32], strides = [1, 1]} : vector<1x128xf32> to vector<1x32xf32>
    %279 = vector.extract_strided_slice %276 {offsets = [0, 64], sizes = [1, 32], strides = [1, 1]} : vector<1x128xf32> to vector<1x32xf32>
    %cst_62 = arith.constant 2.000000e+00 : f32
    %280 = vector.broadcast %cst_62 : f32 to vector<1x32xf32>
    %281 = arith.mulf %280, %279 : vector<1x32xf32>
    %cst_63 = arith.constant 1.000000e+00 : f32
    %282 = vector.broadcast %cst_63 : f32 to vector<1x32xf32>
    %283 = arith.subf %281, %282 : vector<1x32xf32>
    %284 = vector.extract_strided_slice %276 {offsets = [0, 96], sizes = [1, 32], strides = [1, 1]} : vector<1x128xf32> to vector<1x32xf32>
    %285 = arith.mulf %278, %245 : vector<1x32xf32>
    %286 = arith.mulf %277, %283 : vector<1x32xf32>
    %287 = arith.addf %285, %286 : vector<1x32xf32>
    %288 = math.tanh %287 : vector<1x32xf32>
    %289 = arith.mulf %284, %288 : vector<1x32xf32>
    %290 = tpu.concatenate %289, %268 in 1 : vector<1x32xf32>, vector<1x32xf32> -> vector<1x64xf32>
    %cst_64 = arith.constant dense<0.000000e+00> : vector<1x128xf32>
    %291 = tpu.matmul %290, %5, %cst_64 {dimension_numbers = #tpu.dot_dimension_numbers<[1], [0], [0], [1], [0, 0, 1, 1], [], []>} : vector<1x64xf32>, vector<64x128xf32>, vector<1x128xf32> -> vector<1x128xf32>
    %292 = arith.addf %291, %2 : vector<1x128xf32>
    %293 = arith.negf %292 : vector<1x128xf32>
    %294 = math.exp %293 : vector<1x128xf32>
    %cst_65 = arith.constant 1.000000e+00 : f32
    %295 = vector.broadcast %cst_65 : f32 to vector<1x128xf32>
    %296 = arith.addf %295, %294 : vector<1x128xf32>
    %297 = arith.divf %295, %296 : vector<1x128xf32>
    %298 = vector.extract_strided_slice %297 {offsets = [0, 0], sizes = [1, 32], strides = [1, 1]} : vector<1x128xf32> to vector<1x32xf32>
    %299 = vector.extract_strided_slice %297 {offsets = [0, 32], sizes = [1, 32], strides = [1, 1]} : vector<1x128xf32> to vector<1x32xf32>
    %300 = vector.extract_strided_slice %297 {offsets = [0, 64], sizes = [1, 32], strides = [1, 1]} : vector<1x128xf32> to vector<1x32xf32>
    %cst_66 = arith.constant 2.000000e+00 : f32
    %301 = vector.broadcast %cst_66 : f32 to vector<1x32xf32>
    %302 = arith.mulf %301, %300 : vector<1x32xf32>
    %cst_67 = arith.constant 1.000000e+00 : f32
    %303 = vector.broadcast %cst_67 : f32 to vector<1x32xf32>
    %304 = arith.subf %302, %303 : vector<1x32xf32>
    %305 = vector.extract_strided_slice %297 {offsets = [0, 96], sizes = [1, 32], strides = [1, 1]} : vector<1x128xf32> to vector<1x32xf32>
    %306 = arith.mulf %299, %266 : vector<1x32xf32>
    %307 = arith.mulf %298, %304 : vector<1x32xf32>
    %308 = arith.addf %306, %307 : vector<1x32xf32>
    %309 = math.tanh %308 : vector<1x32xf32>
    %310 = arith.mulf %305, %309 : vector<1x32xf32>
    %311 = vector.extract_strided_slice %12 {offsets = [7, 0], sizes = [1, 128], strides = [1, 1]} : vector<8x128xf32> to vector<1x128xf32>
    %cst_68 = arith.constant dense<0.000000e+00> : vector<1x128xf32>
    %312 = tpu.matmul %289, %4, %cst_68 {dimension_numbers = #tpu.dot_dimension_numbers<[1], [0], [0], [1], [0, 0, 1, 1], [], []>} : vector<1x32xf32>, vector<32x128xf32>, vector<1x128xf32> -> vector<1x128xf32>
    %313 = arith.addf %311, %312 : vector<1x128xf32>
    %314 = arith.negf %313 : vector<1x128xf32>
    %315 = math.exp %314 : vector<1x128xf32>
    %cst_69 = arith.constant 1.000000e+00 : f32
    %316 = vector.broadcast %cst_69 : f32 to vector<1x128xf32>
    %317 = arith.addf %316, %315 : vector<1x128xf32>
    %318 = arith.divf %316, %317 : vector<1x128xf32>
    %319 = vector.extract_strided_slice %318 {offsets = [0, 0], sizes = [1, 32], strides = [1, 1]} : vector<1x128xf32> to vector<1x32xf32>
    %320 = vector.extract_strided_slice %318 {offsets = [0, 32], sizes = [1, 32], strides = [1, 1]} : vector<1x128xf32> to vector<1x32xf32>
    %321 = vector.extract_strided_slice %318 {offsets = [0, 64], sizes = [1, 32], strides = [1, 1]} : vector<1x128xf32> to vector<1x32xf32>
    %cst_70 = arith.constant 2.000000e+00 : f32
    %322 = vector.broadcast %cst_70 : f32 to vector<1x32xf32>
    %323 = arith.mulf %322, %321 : vector<1x32xf32>
    %cst_71 = arith.constant 1.000000e+00 : f32
    %324 = vector.broadcast %cst_71 : f32 to vector<1x32xf32>
    %325 = arith.subf %323, %324 : vector<1x32xf32>
    %326 = vector.extract_strided_slice %318 {offsets = [0, 96], sizes = [1, 32], strides = [1, 1]} : vector<1x128xf32> to vector<1x32xf32>
    %327 = arith.mulf %320, %287 : vector<1x32xf32>
    %328 = arith.mulf %319, %325 : vector<1x32xf32>
    %329 = arith.addf %327, %328 : vector<1x32xf32>
    %330 = math.tanh %329 : vector<1x32xf32>
    %331 = arith.mulf %326, %330 : vector<1x32xf32>
    %332 = tpu.concatenate %331, %310 in 1 : vector<1x32xf32>, vector<1x32xf32> -> vector<1x64xf32>
    %cst_72 = arith.constant dense<0.000000e+00> : vector<1x128xf32>
    %333 = tpu.matmul %332, %5, %cst_72 {dimension_numbers = #tpu.dot_dimension_numbers<[1], [0], [0], [1], [0, 0, 1, 1], [], []>} : vector<1x64xf32>, vector<64x128xf32>, vector<1x128xf32> -> vector<1x128xf32>
    %334 = arith.addf %333, %2 : vector<1x128xf32>
    %335 = arith.negf %334 : vector<1x128xf32>
    %336 = math.exp %335 : vector<1x128xf32>
    %cst_73 = arith.constant 1.000000e+00 : f32
    %337 = vector.broadcast %cst_73 : f32 to vector<1x128xf32>
    %338 = arith.addf %337, %336 : vector<1x128xf32>
    %339 = arith.divf %337, %338 : vector<1x128xf32>
    %340 = vector.extract_strided_slice %339 {offsets = [0, 0], sizes = [1, 32], strides = [1, 1]} : vector<1x128xf32> to vector<1x32xf32>
    %341 = vector.extract_strided_slice %339 {offsets = [0, 32], sizes = [1, 32], strides = [1, 1]} : vector<1x128xf32> to vector<1x32xf32>
    %342 = vector.extract_strided_slice %339 {offsets = [0, 64], sizes = [1, 32], strides = [1, 1]} : vector<1x128xf32> to vector<1x32xf32>
    %cst_74 = arith.constant 2.000000e+00 : f32
    %343 = vector.broadcast %cst_74 : f32 to vector<1x32xf32>
    %344 = arith.mulf %343, %342 : vector<1x32xf32>
    %cst_75 = arith.constant 1.000000e+00 : f32
    %345 = vector.broadcast %cst_75 : f32 to vector<1x32xf32>
    %346 = arith.subf %344, %345 : vector<1x32xf32>
    %347 = vector.extract_strided_slice %339 {offsets = [0, 96], sizes = [1, 32], strides = [1, 1]} : vector<1x128xf32> to vector<1x32xf32>
    %348 = arith.mulf %341, %308 : vector<1x32xf32>
    %349 = arith.mulf %340, %346 : vector<1x32xf32>
    %350 = arith.addf %348, %349 : vector<1x32xf32>
    %351 = math.tanh %350 : vector<1x32xf32>
    %352 = arith.mulf %347, %351 : vector<1x32xf32>
    %cst_76 = arith.constant dense<0.000000e+00> : vector<1x128xf32>
    %353 = tpu.matmul %352, %6, %cst_76 {dimension_numbers = #tpu.dot_dimension_numbers<[1], [0], [0], [1], [0, 0, 1, 1], [], []>} : vector<1x32xf32>, vector<32x128xf32>, vector<1x128xf32> -> vector<1x128xf32>
    %354 = arith.addf %353, %3 : vector<1x128xf32>
    %355 = vector.extract_strided_slice %354 {offsets = [0, 0], sizes = [1, 4], strides = [1, 1]} : vector<1x128xf32> to vector<1x4xf32>
    %c0_77 = arith.constant 0 : index
    %c0_78 = arith.constant 0 : index
    %356 = vector.load %arg2[%c0_77, %c0_78] : memref<1x4xf32, #tpu.memory_space<vmem>>, vector<1x4xf32>
    tpu.vector_store %arg2[%c0_77, %c0_78], %355 {strides = array<i32>} : memref<1x4xf32, #tpu.memory_space<vmem>>, vector<1x4xf32>,
    return
  }
}

</mosaic_0001>

<bundles_post_ra>
// kernel: simple_rnn_forward.1
= control target key start
LH: loop header
LB: loop body
LE: loop exit
PB: predicated region body
PF: predicated region fallthrough
CT: control target
= control target key end

     0   :  { %7 = vsyncpa [#allocation3], 0  ;;  %s2953_s0 = inlined_call_operand.vmem [shape: f32[8,1], index: 0, kind: input, shape index: {}]   ;;  %s2954_s1 = inlined_call_operand.hbm [shape: f32[136,128], index: 1, kind: input, shape index: {}]   ;;  %s2955_s2 = inlined_call_operand.hbm [shape: f32[1,4], index: 2, kind: output, shape index: {}]  }
   0x1   :  { %8 = vsyncpa [#allocation4], 0  ;;  %s2590_s9 = smov [#allocation2]   ;;  %s2542_s13 = scalar_lea.hbm %s2954_s1, 2176 }
   0x2   :  { %s16_s10 = sshll.u32 %s2590_s9, 4  ;;  %p2543_p0 = scmp.ne.s32.totalorder %s2954_s1, %s2542_s13  ;;  %s17_s10 = int_to_ptr.vmem [resolvable:$true] %s16_s10 }
   0x3   :  { %p2546_p1 = scmp.lt.u32.totalorder %s2542_s13, %s2954_s1 }
   0x5   :  { %p2548_p2 = pnand %p2546_p1, %p2543_p0 }
   0x7   :  { %2551 = shalt.err (!%p2548_p2)
}
   0x8   :  { %s2552_s18 = scalar_lea.vmem %s17_s10, 2176  ;;  %p2557_p4 = scmp.lt.s32.totalorder %s17_s10, %s17_s10 }
   0x9   :  { %p2553_p3 = scmp.ne.s32.totalorder %s17_s10, %s2552_s18  ;;  %p2558_p5 = scmp.lt.s32.totalorder %s2552_s18, %s2552_s18 }
   0xb   :  { %p2559_p6 = por %p2558_p5, %p2557_p4 }
   0xd   :  { %p2560_p7 = pnand %p2559_p6, %p2553_p3 }
   0xf   :  { %2563 = shalt.err (!%p2560_p7)
}
  0x10   :  { %s2591_s19 = smov 128   ;;  %s2592_s20 = smov 8  }
  0x11   :  { %22 = dma.hbm_to_vmem [thread:$0]  %s2954_s1, 2176, %s17_s10, [#allocation3], %s2591_s19, %s2591_s19, %s2592_s20  }
  0x12   :  { %2586 = dma.done.wait [#allocation3], 2176  }
  0x13   :  { %2587 = vsyncadd [#allocation3], 4294965120  ;;  %v2593_v0 = vmov 0.0|0.0   ;;  %vm2594_vm0 = vmmov 0   ;;  %v2595_v1 = vmov 0.0   ;;  %v2596_v2 = vmov 0  }
  0x14   :  { %2285 = vmatprep.subr.bf16.mxu0 %v2593_v0  ;;  %2042 = vmatprep.mubr.msk.f32.mxu0 %vm2594_vm0, %v2595_v1  ;;  %v30_v3 = vld [vmem:[#allocation2 + $0x8] sm:$0xff]  ;;  %v31_v4 = vld [vmem:[#allocation2 + $0x10] sm:$0xff]  ;;  %v32_v5 = vld [vmem:[#allocation2 + $0x18] sm:$0xff]  ;;  %s2598_s24 = smov 32   ;;  %vm62_vm1 = vcmask 261120   ;;  %vm167_vm2 = vcmask 523264  }
  0x15   :  { %2445 = vset.pattern.permute.xlu0 %v2596_v2  ;;  %2291 = vmatprep.subr.bf16.mxu1 %v2593_v0  ;;  %v2633_v6 = vpack.c.bf16 %v31_v4, %v30_v3  ;;  %v33_v7 = vld [vmem:[#allocation2 + $0x20] sm:$0xff]  ;;  %v34_v29 = vld [vmem:[#allocation2 + $0x28] sm:$0xff]  ;;  %v35_v30 = vld [vmem:[#allocation2 + $0x30] sm:$0xff]  ;;  %s2599_s25 = smov [#allocation5]   ;;  %vm1850_vm3 = vcmask 24576  }
  0x16   :  { %2061 = vmatprep.mubr.msk.f32.mxu1 %vm2594_vm0, %v2595_v1  ;;  %v46_v8 = vld [vmem:[%s2953_s0] sm:$0xff]  ;;  %v2639_v9 = vpack.c.bf16 %v33_v7, %v32_v5  ;;  %s2597_s0 = smov 64   ;;  %v36_v31 = vld [vmem:[#allocation2 + $0x38] sm:$0xff]  ;;  %v2659_v32 = vpack.c.bf16 %v35_v30, %v34_v29  ;;  %v38_v35 = vld [vmem:[#allocation2 + $0x48] sm:$0xff]  ;;  %s1858_s26 = sshll.u32 %s2599_s25, 4  ;;  %s1859_s26 = int_to_ptr.vmem [resolvable:$true] %s1858_s26 }
  0x17   :  { %49 = vperm.xlu0 %2445, %v46_v8   ;;  %2287 = vmatpush3.bf16.msra.mxu0 %v2633_v6  ;;  %v1867_v11 = vld [vmem:[#allocation2] ss:$0 sm:$0xff]  ;;  %v1868_v13 = vld [vmem:[#allocation2 + $0x1] ss:$0 sm:$0xff]  ;;  %v39_v36 = vld [vmem:[#allocation2 + $0x50] sm:$0xff]  ;;  %s2564_s27 = scalar_lea.vmem %s1859_s26, 16  ;;  %p2569_p9 = scmp.lt.s32.totalorder %s1859_s26, %s1859_s26 }
  0x18   :  { %2288 = vmatprep.subr.bf16.mxu0 %v2593_v0  ;;  %v37_v33 = vld [vmem:[#allocation2 + $0x40] sm:$0xff]  ;;  %2293 = vmatpush3.bf16.msra.mxu1 %v2659_v32  ;;  %v2666_v37 = vpack.c.bf16 %v39_v36, %v38_v35  ;;  %v40_v38 = vld [vmem:[#allocation2 + $0x58] sm:$0xff]  ;;  %p2565_p8 = scmp.ne.s32.totalorder %s1859_s26, %s2564_s27  ;;  %s2568_s28 = scalar_lea.vmem %s1859_s26, 32 }
  0x19   :  { %v2662_v34 = vpack.c.bf16 %v37_v33, %v36_v31  ;;  %2294 = vmatprep.subr.bf16.mxu1 %v2593_v0  ;;  %v41_v39 = vld [vmem:[#allocation2 + $0x60] sm:$0xff]  ;;  %p2570_p10 = scmp.lt.s32.totalorder %s2568_s28, %s2564_s27 }
  0x1a   :  { %v2671_v41 = vpack.c.bf16 %v41_v39, %v40_v38  ;;  %v2696_v46 = vld [vmem:[#allocation2 + $0x2] sm:$0x1] }
  0x1b   :  { %2290 = vmatpush3.bf16.msra.mxu0 %v2639_v9  ;;  %p2571_p11 = por %p2570_p10, %p2569_p9 }
  0x1c   :  { %2303 = vmatprep.subr.bf16.mxu0 %v2593_v0  ;;  %2296 = vmatpush3.bf16.msra.mxu1 %v2662_v34 }
  0x1d   :  { %2297 = vmatprep.subr.bf16.mxu1 %v2593_v0  ;;  %p2572_p12 = pnand %p2571_p11, %p2565_p8 }
  0x1e   :  { %2043 = vmatmul.mubr.f32.vlgmr.msra.gmra.mrb[0].mxu0 %v2595_v1 }
  0x1f   :  { %2305 = vmatpush3.bf16.msra.mxu0 %v2633_v6  ;;  %2072 = vmatprep.mubr.msk.f32.mxu0 %vm2594_vm0, %v2595_v1 }
  0x20   :  { %2306 = vmatprep.subr.bf16.mxu0 %v2593_v0  ;;  %2299 = vmatpush3.bf16.msra.mxu1 %v2666_v37 }
  0x21   :  { %2300 = vmatprep.subr.bf16.mxu1 %v2593_v0 }
  0x23   :  { %2308 = vmatpush3.bf16.msra.mxu0 %v2639_v9 }
  0x24   :  { %2309 = vmatprep.subr.bf16.mxu0 %v2593_v0  ;;  %2302 = vmatpush3.bf16.msra.mxu1 %v2671_v41 }
  0x25   :  { %2321 = vmatprep.subr.bf16.mxu1 %v2593_v0 }
  0x96   :  { %v50_v10 = vpop.permute.xlu0 %49 }
  0x97   :  { %v56_v12 = vmul.f32 %v1867_v11, %v50_v10 }
  0x99   :  { %v2651_v14 = vadd.f32 %v1868_v13, %v56_v12 }
  0xf1   :  { %v132_v15 = vpop.f32.mrb[0].mxu0 }
  0xf2   :  { %v136_v16 = vadd.f32 %v132_v15, %v2651_v14  ;;  %v2044_v17 = vpop.f32.mrb[1].mxu0 }
  0xf4   :  { %v1869_v18 = vmul.f32 -1.442695, %v136_v16 }
  0xf6   :  { %2446 = vpow2.f32 %v1869_v18 }
 0x100   :  { %v2447_v19 = vpop.eup %2446 }
 0x101   :  { %v140_v20 = vadd.f32 1.0, %v2447_v19 }
 0x103   :  { %2448 = vrcp.f32 %v140_v20 }
 0x10d   :  { %v2449_v21 = vpop.eup %2448 }
 0x10e   :  { %v143_v22 = vmul.f32 2.0, %v2449_v21  ;;  %v145_v26 = vmul.f32 0.0, %v2449_v21 }
 0x110   :  { %v1870_v23 = vadd.f32 -1.0, %v143_v22 }
 0x112   :  { %147 = vrot.lane.b32.xlu0 %v1870_v23, %s2597_s0 }
 0x184   :  { %v148_v24 = vpop.permute.xlu0 %147 }
 0x185   :  { %v150_v25 = vmul.f32 %v2449_v21, %v148_v24 }
 0x187   :  { %152 = vrot.lane.b32.xlu1 %v150_v25, %s2598_s24 }
 0x1f9   :  { %v153_v27 = vpop.permute.xlu1 %152 }
 0x1fa   :  { %v2656_v28 = vadd.f32 %v153_v27, %v145_v26 }
 0x1fc   :  { %2450 = vtanh.f32 %v2656_v28  ;;  %v351_v10 = vrot.slane %v2656_v28, 7 }
 0x206   :  { %v2451_v40 = vpop.eup %2450 }
 0x207   :  { %158 = vrot.lane.b32.xlu1 %v2451_v40, %s2597_s0 }
 0x279   :  { %v159_v42 = vpop.permute.xlu1 %158 }
 0x27a   :  { %v161_v43 = vmul.f32 %v2449_v21, %v159_v42 }
 0x27c   :  { %163 = vrot.lane.b32.xlu0 %v161_v43, %s2598_s24 }
 0x2ee   :  { %v164_v44 = vpop.permute.xlu0 %163 }
 0x2ef   :  { %v166_v45 = vsel %vm62_vm1, %v164_v44, 0.0  ;;  %2073 = vmatmul.mubr.msk.f32.vlgmr.msra.gmra.mrb[2].mxu0 %vm62_vm1, %v164_v44 }
 0x2f0   :  { %2062 = vmatmul.mubr.msk.f32.vlgmr.msra.gmra.mrb[0].mxu1 %vm167_vm2, %v166_v45  ;;  %2311 = vmatpush3.bf16.msra.mxu0 %v2659_v32 }
 0x2f1   :  { %2312 = vmatprep.subr.bf16.mxu0 %v2593_v0  ;;  %2323 = vmatpush3.bf16.msra.mxu1 %v2633_v6 }
 0x2f2   :  { %2324 = vmatprep.subr.bf16.mxu1 %v2593_v0  ;;  %2091 = vmatprep.mubr.msk.f32.mxu0 %vm2594_vm0, %v2595_v1 }
 0x2f3   :  { %2102 = vmatprep.mubr.msk.f32.mxu1 %vm2594_vm0, %v2595_v1 }
 0x2f4   :  { %2314 = vmatpush3.bf16.msra.mxu0 %v2662_v34 }
 0x2f5   :  { %2315 = vmatprep.subr.bf16.mxu0 %v2593_v0  ;;  %2326 = vmatpush3.bf16.msra.mxu1 %v2639_v9 }
 0x2f6   :  { %2327 = vmatprep.subr.bf16.mxu1 %v2593_v0 }
 0x2f8   :  { %2317 = vmatpush3.bf16.msra.mxu0 %v2666_v37 }
 0x2f9   :  { %2318 = vmatprep.subr.bf16.mxu0 %v2593_v0 }
 0x2fc   :  { %2320 = vmatpush3.bf16.msra.mxu0 %v2671_v41 }
 0x2fd   :  { %2339 = vmatprep.subr.bf16.mxu0 %v2593_v0 }
 0x3c2   :  { %v334_v47 = vpop.f32.mrb[2].mxu0 }
 0x3c3   :  { %v339_v48 = vrot.slane %v334_v47, 7  ;;  %v237_v49 = vpop.f32.mrb[0].mxu1  ;;  %v2074_v50 = vpop.f32.mrb[3].mxu0 }
 0x3c4   :  { %v238_v51 = vadd.f32 %v237_v49, %v2696_v46  ;;  %v2063_v52 = vpop.f32.mrb[1].mxu1 }
 0x3c5   :  { %v341_v53 = vadd.f32 %v339_v48, %v2651_v14 }
 0x3c6   :  { %v1872_v54 = vmul.f32 -1.442695, %v238_v51 }
 0x3c7   :  { %v1875_v55 = vmul.f32 -1.442695, %v341_v53 }
 0x3c8   :  { %2452 = vpow2.f32 %v1872_v54 }
 0x3c9   :  { %2454 = vpow2.f32 %v1875_v55 }
 0x3d2   :  { %v2453_v56 = vpop.eup %2452 }
 0x3d3   :  { %v2455_v57 = vpop.eup %2454  ;;  %v244_v58 = vadd.f32 1.0, %v2453_v56 }
 0x3d4   :  { %v345_v59 = vadd.f32 1.0, %v2455_v57 }
 0x3d5   :  { %2456 = vrcp.f32 %v244_v58 }
 0x3d6   :  { %2458 = vrcp.f32 %v345_v59 }
 0x3df   :  { %v2457_v60 = vpop.eup %2456 }
 0x3e0   :  { %v2459_v61 = vpop.eup %2458  ;;  %v247_v62 = vmul.f32 2.0, %v2457_v60  ;;  %v249_v11 = vmul.f32 0.0, %v2457_v60 }
 0x3e1   :  { %v348_v63 = vmul.f32 2.0, %v2459_v61  ;;  %v353_v13 = vmul.f32 %v2459_v61, %v351_v10 }
 0x3e2   :  { %v1873_v2 = vadd.f32 -1.0, %v247_v62 }
 0x3e3   :  { %v1876_v3 = vadd.f32 -1.0, %v348_v63 }
 0x3e4   :  { %251 = vrot.lane.b32.xlu1 %v1873_v2, %s2597_s0 }
 0x3e5   :  { %355 = vrot.lane.b32.xlu0 %v1876_v3, %s2597_s0 }
 0x456   :  { %v252_v4 = vpop.permute.xlu1 %251 }
 0x457   :  { %v254_v5 = vmul.f32 %v2457_v60, %v252_v4  ;;  %v356_v7 = vpop.permute.xlu0 %355 }
 0x458   :  { %v358_v8 = vmul.f32 %v2459_v61, %v356_v7 }
 0x459   :  { %256 = vrot.lane.b32.xlu1 %v254_v5, %s2598_s24 }
 0x45a   :  { %360 = vrot.lane.b32.xlu0 %v358_v8, %s2598_s24 }
 0x4cb   :  { %v257_v12 = vpop.permute.xlu1 %256 }
 0x4cc   :  { %v2705_v15 = vadd.f32 %v257_v12, %v249_v11  ;;  %v361_v16 = vpop.permute.xlu0 %360 }
 0x4cd   :  { %v2707_v17 = vadd.f32 %v361_v16, %v353_v13 }
 0x4ce   :  { %2460 = vtanh.f32 %v2705_v15 }
 0x4cf   :  { %2462 = vtanh.f32 %v2707_v17  ;;  %v567_v59 = vrot.slane %v2707_v17, 7 }
 0x4d8   :  { %v2461_v18 = vpop.eup %2460 }
 0x4d9   :  { %v2463_v19 = vpop.eup %2462  ;;  %262 = vrot.lane.b32.xlu1 %v2461_v18, %s2597_s0 }
 0x4da   :  { %366 = vrot.lane.b32.xlu0 %v2463_v19, %s2597_s0 }
 0x54b   :  { %v263_v20 = vpop.permute.xlu1 %262 }
 0x54c   :  { %v265_v21 = vmul.f32 %v2457_v60, %v263_v20  ;;  %v367_v22 = vpop.permute.xlu0 %366 }
 0x54d   :  { %v369_v23 = vmul.f32 %v2459_v61, %v367_v22 }
 0x54e   :  { %v375_v24 = vrot.slane %v265_v21, 7 }
 0x54f   :  { %371 = vrot.lane.b32.xlu1 %v369_v23, %s2598_s24  ;;  %v479_v25 = vrot.slane %v369_v23, 1 }
 0x550   :  { %376 = vrot.lane.b32.xlu0 %v375_v24, %s2597_s0 }
 0x553   :  { %480 = vrot.lane.b32.xlu1 %v479_v25, %s2598_s24 }
 0x5c1   :  { %v372_v26 = vpop.permute.xlu1 %371 }
 0x5c2   :  { %v377_v27 = vpop.permute.xlu0 %376 }
 0x5c3   :  { %v379_v28 = vsel %vm62_vm1, %v372_v26, %v377_v27 }
 0x5c4   :  { %v381_v29 = vrot.slane %v379_v28, 1 }
 0x5c5   :  { %v481_v30 = vpop.permute.xlu1 %480 }
 0x5c6   :  { %2092 = vmatmul.mubr.msk.f32.vlgmr.msra.gmra.mrb[4].mxu0 %vm167_vm2, %v381_v29  ;;  %2103 = vmatmul.mubr.msk.f32.vlgmr.msra.gmra.mrb[2].mxu1 %vm62_vm1, %v481_v30 }
 0x5c7   :  { %2329 = vmatpush3.bf16.msra.mxu1 %v2659_v32  ;;  %2341 = vmatpush3.bf16.msra.mxu0 %v2633_v6 }
 0x5c8   :  { %2330 = vmatprep.subr.bf16.mxu1 %v2593_v0  ;;  %2342 = vmatprep.subr.bf16.mxu0 %v2593_v0 }
 0x5c9   :  { %2121 = vmatprep.mubr.msk.f32.mxu1 %vm2594_vm0, %v2595_v1  ;;  %2132 = vmatprep.mubr.msk.f32.mxu0 %vm2594_vm0, %v2595_v1 }
 0x5cb   :  { %2332 = vmatpush3.bf16.msra.mxu1 %v2662_v34  ;;  %2344 = vmatpush3.bf16.msra.mxu0 %v2639_v9 }
 0x5cc   :  { %2333 = vmatprep.subr.bf16.mxu1 %v2593_v0  ;;  %2345 = vmatprep.subr.bf16.mxu0 %v2593_v0 }
 0x5cf   :  { %2335 = vmatpush3.bf16.msra.mxu1 %v2666_v37 }
 0x5d0   :  { %2336 = vmatprep.subr.bf16.mxu1 %v2593_v0 }
 0x5d3   :  { %2338 = vmatpush3.bf16.msra.mxu1 %v2671_v41 }
 0x5d4   :  { %2357 = vmatprep.subr.bf16.mxu1 %v2593_v0 }
 0x699   :  { %v450_v31 = vpop.f32.mrb[4].mxu0  ;;  %v550_v33 = vpop.f32.mrb[2].mxu1 }
 0x69a   :  { %v451_v35 = vadd.f32 %v450_v31, %v2696_v46  ;;  %v555_v36 = vrot.slane %v550_v33, 6  ;;  %v2093_v38 = vpop.f32.mrb[5].mxu0  ;;  %v2104_v39 = vpop.f32.mrb[3].mxu1 }
 0x69c   :  { %v1878_v40 = vmul.f32 -1.442695, %v451_v35  ;;  %v557_v42 = vadd.f32 %v555_v36, %v2651_v14 }
 0x69e   :  { %2464 = vpow2.f32 %v1878_v40  ;;  %v1881_v43 = vmul.f32 -1.442695, %v557_v42 }
 0x6a0   :  { %2466 = vpow2.f32 %v1881_v43 }
 0x6a8   :  { %v2465_v44 = vpop.eup %2464 }
 0x6a9   :  { %v457_v45 = vadd.f32 1.0, %v2465_v44 }
 0x6aa   :  { %v2467_v47 = vpop.eup %2466 }
 0x6ab   :  { %2468 = vrcp.f32 %v457_v45  ;;  %v561_v48 = vadd.f32 1.0, %v2467_v47 }
 0x6ad   :  { %2470 = vrcp.f32 %v561_v48 }
 0x6b5   :  { %v2469_v49 = vpop.eup %2468 }
 0x6b6   :  { %v460_v50 = vmul.f32 2.0, %v2469_v49  ;;  %v462_v60 = vmul.f32 %v2469_v49, %v2705_v15 }
 0x6b7   :  { %v2471_v51 = vpop.eup %2470 }
 0x6b8   :  { %v1879_v52 = vadd.f32 -1.0, %v460_v50  ;;  %v564_v53 = vmul.f32 2.0, %v2471_v51  ;;  %v569_v63 = vmul.f32 %v2471_v51, %v567_v59 }
 0x6ba   :  { %464 = vrot.lane.b32.xlu0 %v1879_v52, %s2597_s0  ;;  %v1882_v54 = vadd.f32 -1.0, %v564_v53 }
 0x6bc   :  { %571 = vrot.lane.b32.xlu1 %v1882_v54, %s2597_s0 }
 0x72c   :  { %v465_v55 = vpop.permute.xlu0 %464 }
 0x72d   :  { %v467_v56 = vmul.f32 %v2469_v49, %v465_v55 }
 0x72e   :  { %v572_v57 = vpop.permute.xlu1 %571 }
 0x72f   :  { %v574_v58 = vmul.f32 %v2471_v51, %v572_v57  ;;  %469 = vrot.lane.b32.xlu0 %v467_v56, %s2598_s24 }
 0x731   :  { %576 = vrot.lane.b32.xlu1 %v574_v58, %s2598_s24 }
 0x7a1   :  { %v470_v61 = vpop.permute.xlu0 %469 }
 0x7a2   :  { %v2743_v62 = vadd.f32 %v470_v61, %v462_v60 }
 0x7a3   :  { %v577_v2 = vpop.permute.xlu1 %576 }
 0x7a4   :  { %2472 = vtanh.f32 %v2743_v62  ;;  %v2746_v3 = vadd.f32 %v577_v2, %v569_v63 }
 0x7a6   :  { %2474 = vtanh.f32 %v2746_v3 }
 0x7ae   :  { %v2473_v4 = vpop.eup %2472 }
 0x7af   :  { %475 = vrot.lane.b32.xlu0 %v2473_v4, %s2597_s0 }
 0x7b0   :  { %v2475_v5 = vpop.eup %2474 }
 0x7b1   :  { %582 = vrot.lane.b32.xlu1 %v2475_v5, %s2597_s0 }
 0x821   :  { %v476_v7 = vpop.permute.xlu0 %475 }
 0x822   :  { %v478_v8 = vmul.f32 %v2469_v49, %v476_v7  ;;  %v783_v49 = vrot.slane %v2746_v3, 7 }
 0x823   :  { %v583_v10 = vpop.permute.xlu1 %582 }
 0x824   :  { %v591_v11 = vrot.slane %v478_v8, 6  ;;  %v585_v12 = vmul.f32 %v2471_v51, %v583_v10 }
 0x826   :  { %592 = vrot.lane.b32.xlu1 %v591_v11, %s2597_s0  ;;  %587 = vrot.lane.b32.xlu0 %v585_v12, %s2598_s24  ;;  %v695_v13 = vrot.slane %v585_v12, 2 }
 0x82a   :  { %696 = vrot.lane.b32.xlu0 %v695_v13, %s2598_s24 }
 0x898   :  { %v588_v15 = vpop.permute.xlu0 %587  ;;  %v593_v16 = vpop.permute.xlu1 %592 }
 0x899   :  { %v595_v17 = vsel %vm62_vm1, %v588_v15, %v593_v16 }
 0x89a   :  { %v597_v18 = vrot.slane %v595_v17, 2 }
 0x89c   :  { %v697_v19 = vpop.permute.xlu0 %696  ;;  %2122 = vmatmul.mubr.msk.f32.vlgmr.msra.gmra.mrb[4].mxu1 %vm167_vm2, %v597_v18 }
 0x89d   :  { %2133 = vmatmul.mubr.msk.f32.vlgmr.msra.gmra.mrb[6].mxu0 %vm62_vm1, %v697_v19  ;;  %2359 = vmatpush3.bf16.msra.mxu1 %v2633_v6 }
 0x89e   :  { %2347 = vmatpush3.bf16.msra.mxu0 %v2659_v32  ;;  %2360 = vmatprep.subr.bf16.mxu1 %v2593_v0 }
 0x89f   :  { %2348 = vmatprep.subr.bf16.mxu0 %v2593_v0  ;;  %2151 = vmatprep.mubr.msk.f32.mxu0 %vm2594_vm0, %v2595_v1 }
 0x8a0   :  { %2162 = vmatprep.mubr.msk.f32.mxu1 %vm2594_vm0, %v2595_v1 }
 0x8a1   :  { %2362 = vmatpush3.bf16.msra.mxu1 %v2639_v9 }
 0x8a2   :  { %2350 = vmatpush3.bf16.msra.mxu0 %v2662_v34  ;;  %2363 = vmatprep.subr.bf16.mxu1 %v2593_v0 }
 0x8a3   :  { %2351 = vmatprep.subr.bf16.mxu0 %v2593_v0 }
 0x8a6   :  { %2353 = vmatpush3.bf16.msra.mxu0 %v2666_v37 }
 0x8a7   :  { %2354 = vmatprep.subr.bf16.mxu0 %v2593_v0 }
 0x8aa   :  { %2356 = vmatpush3.bf16.msra.mxu0 %v2671_v41 }
 0x8ab   :  { %2375 = vmatprep.subr.bf16.mxu0 %v2593_v0 }
 0x96f   :  { %v666_v20 = vpop.f32.mrb[4].mxu1 }
 0x970   :  { %v667_v21 = vadd.f32 %v666_v20, %v2696_v46  ;;  %v2123_v22 = vpop.f32.mrb[5].mxu1  ;;  %v766_v23 = vpop.f32.mrb[6].mxu0 }
 0x971   :  { %v771_v24 = vrot.slane %v766_v23, 5  ;;  %v2134_v25 = vpop.f32.mrb[7].mxu0 }
 0x972   :  { %v1884_v26 = vmul.f32 -1.442695, %v667_v21 }
 0x973   :  { %v773_v27 = vadd.f32 %v771_v24, %v2651_v14 }
 0x974   :  { %2476 = vpow2.f32 %v1884_v26 }
 0x975   :  { %v1887_v28 = vmul.f32 -1.442695, %v773_v27 }
 0x977   :  { %2478 = vpow2.f32 %v1887_v28 }
 0x97e   :  { %v2477_v29 = vpop.eup %2476 }
 0x97f   :  { %v673_v30 = vadd.f32 1.0, %v2477_v29 }
 0x981   :  { %v2479_v31 = vpop.eup %2478  ;;  %2480 = vrcp.f32 %v673_v30 }
 0x982   :  { %v777_v33 = vadd.f32 1.0, %v2479_v31 }
 0x984   :  { %2482 = vrcp.f32 %v777_v33 }
 0x98b   :  { %v2481_v35 = vpop.eup %2480 }
 0x98c   :  { %v676_v36 = vmul.f32 2.0, %v2481_v35  ;;  %v678_v48 = vmul.f32 %v2481_v35, %v2743_v62 }
 0x98e   :  { %v2483_v38 = vpop.eup %2482  ;;  %v1885_v39 = vadd.f32 -1.0, %v676_v36 }
 0x98f   :  { %v780_v40 = vmul.f32 2.0, %v2483_v38  ;;  %v785_v52 = vmul.f32 %v2483_v38, %v783_v49 }
 0x990   :  { %680 = vrot.lane.b32.xlu1 %v1885_v39, %s2597_s0 }
 0x991   :  { %v1888_v42 = vadd.f32 -1.0, %v780_v40 }
 0x993   :  { %787 = vrot.lane.b32.xlu0 %v1888_v42, %s2597_s0 }
 0xa02   :  { %v681_v43 = vpop.permute.xlu1 %680 }
 0xa03   :  { %v683_v44 = vmul.f32 %v2481_v35, %v681_v43 }
 0xa05   :  { %v788_v45 = vpop.permute.xlu0 %787  ;;  %685 = vrot.lane.b32.xlu1 %v683_v44, %s2598_s24 }
 0xa06   :  { %v790_v47 = vmul.f32 %v2483_v38, %v788_v45 }
 0xa08   :  { %792 = vrot.lane.b32.xlu0 %v790_v47, %s2598_s24 }
 0xa77   :  { %v686_v50 = vpop.permute.xlu1 %685 }
 0xa78   :  { %v2781_v51 = vadd.f32 %v686_v50, %v678_v48 }
 0xa7a   :  { %2484 = vtanh.f32 %v2781_v51  ;;  %v793_v53 = vpop.permute.xlu0 %792 }
 0xa7b   :  { %v2784_v54 = vadd.f32 %v793_v53, %v785_v52 }
 0xa7d   :  { %2486 = vtanh.f32 %v2784_v54 }
 0xa84   :  { %v2485_v55 = vpop.eup %2484 }
 0xa85   :  { %691 = vrot.lane.b32.xlu1 %v2485_v55, %s2597_s0 }
 0xa87   :  { %v2487_v56 = vpop.eup %2486 }
 0xa88   :  { %798 = vrot.lane.b32.xlu0 %v2487_v56, %s2597_s0 }
 0xaf7   :  { %v692_v57 = vpop.permute.xlu1 %691 }
 0xaf8   :  { %v694_v58 = vmul.f32 %v2481_v35, %v692_v57  ;;  %v999_v35 = vrot.slane %v2784_v54, 7 }
 0xafa   :  { %v807_v59 = vrot.slane %v694_v58, 5  ;;  %v799_v60 = vpop.permute.xlu0 %798 }
 0xafb   :  { %v801_v61 = vmul.f32 %v2483_v38, %v799_v60 }
 0xafc   :  { %808 = vrot.lane.b32.xlu0 %v807_v59, %s2597_s0 }
 0xafd   :  { %803 = vrot.lane.b32.xlu1 %v801_v61, %s2598_s24  ;;  %v911_v62 = vrot.slane %v801_v61, 3 }
 0xb01   :  { %912 = vrot.lane.b32.xlu1 %v911_v62, %s2598_s24 }
 0xb6e   :  { %v809_v63 = vpop.permute.xlu0 %808 }
 0xb6f   :  { %v804_v2 = vpop.permute.xlu1 %803 }
 0xb70   :  { %v811_v3 = vsel %vm62_vm1, %v804_v2, %v809_v63 }
 0xb71   :  { %v813_v4 = vrot.slane %v811_v3, 3 }
 0xb73   :  { %2152 = vmatmul.mubr.msk.f32.vlgmr.msra.gmra.mrb[8].mxu0 %vm167_vm2, %v813_v4  ;;  %v913_v5 = vpop.permute.xlu1 %912 }
 0xb74   :  { %2163 = vmatmul.mubr.msk.f32.vlgmr.msra.gmra.mrb[6].mxu1 %vm62_vm1, %v913_v5  ;;  %2377 = vmatpush3.bf16.msra.mxu0 %v2633_v6 }
 0xb75   :  { %2365 = vmatpush3.bf16.msra.mxu1 %v2659_v32  ;;  %2378 = vmatprep.subr.bf16.mxu0 %v2593_v0 }
 0xb76   :  { %2366 = vmatprep.subr.bf16.mxu1 %v2593_v0  ;;  %2181 = vmatprep.mubr.msk.f32.mxu1 %vm2594_vm0, %v2595_v1 }
 0xb77   :  { %2192 = vmatprep.mubr.msk.f32.mxu0 %vm2594_vm0, %v2595_v1 }
 0xb78   :  { %2380 = vmatpush3.bf16.msra.mxu0 %v2639_v9 }
 0xb79   :  { %2368 = vmatpush3.bf16.msra.mxu1 %v2662_v34  ;;  %2381 = vmatprep.subr.bf16.mxu0 %v2593_v0 }
 0xb7a   :  { %2369 = vmatprep.subr.bf16.mxu1 %v2593_v0 }
 0xb7d   :  { %2371 = vmatpush3.bf16.msra.mxu1 %v2666_v37 }
 0xb7e   :  { %2372 = vmatprep.subr.bf16.mxu1 %v2593_v0 }
 0xb81   :  { %2374 = vmatpush3.bf16.msra.mxu1 %v2671_v41 }
 0xb82   :  { %2393 = vmatprep.subr.bf16.mxu1 %v2593_v0 }
 0xc46   :  { %v882_v7 = vpop.f32.mrb[8].mxu0 }
 0xc47   :  { %v883_v8 = vadd.f32 %v882_v7, %v2696_v46  ;;  %v2153_v10 = vpop.f32.mrb[9].mxu0  ;;  %v982_v11 = vpop.f32.mrb[6].mxu1 }
 0xc48   :  { %v987_v12 = vrot.slane %v982_v11, 4  ;;  %v2164_v13 = vpop.f32.mrb[7].mxu1 }
 0xc49   :  { %v1890_v15 = vmul.f32 -1.442695, %v883_v8 }
 0xc4a   :  { %v989_v16 = vadd.f32 %v987_v12, %v2651_v14 }
 0xc4b   :  { %2488 = vpow2.f32 %v1890_v15 }
 0xc4c   :  { %v1893_v17 = vmul.f32 -1.442695, %v989_v16 }
 0xc4e   :  { %2490 = vpow2.f32 %v1893_v17 }
 0xc55   :  { %v2489_v18 = vpop.eup %2488 }
 0xc56   :  { %v889_v19 = vadd.f32 1.0, %v2489_v18 }
 0xc58   :  { %v2491_v20 = vpop.eup %2490  ;;  %2492 = vrcp.f32 %v889_v19 }
 0xc59   :  { %v993_v21 = vadd.f32 1.0, %v2491_v20 }
 0xc5b   :  { %2494 = vrcp.f32 %v993_v21 }
 0xc62   :  { %v2493_v22 = vpop.eup %2492 }
 0xc63   :  { %v892_v23 = vmul.f32 2.0, %v2493_v22  ;;  %v894_v33 = vmul.f32 %v2493_v22, %v2781_v51 }
 0xc65   :  { %v2495_v24 = vpop.eup %2494  ;;  %v1891_v25 = vadd.f32 -1.0, %v892_v23 }
 0xc66   :  { %v996_v26 = vmul.f32 2.0, %v2495_v24  ;;  %v1001_v39 = vmul.f32 %v2495_v24, %v999_v35 }
 0xc67   :  { %896 = vrot.lane.b32.xlu0 %v1891_v25, %s2597_s0 }
 0xc68   :  { %v1894_v27 = vadd.f32 -1.0, %v996_v26 }
 0xc6a   :  { %1003 = vrot.lane.b32.xlu1 %v1894_v27, %s2597_s0 }
 0xcd9   :  { %v897_v28 = vpop.permute.xlu0 %896 }
 0xcda   :  { %v899_v29 = vmul.f32 %v2493_v22, %v897_v28 }
 0xcdc   :  { %901 = vrot.lane.b32.xlu0 %v899_v29, %s2598_s24  ;;  %v1004_v30 = vpop.permute.xlu1 %1003 }
 0xcdd   :  { %v1006_v31 = vmul.f32 %v2495_v24, %v1004_v30 }
 0xcdf   :  { %1008 = vrot.lane.b32.xlu1 %v1006_v31, %s2598_s24 }
 0xd4e   :  { %v902_v36 = vpop.permute.xlu0 %901 }
 0xd4f   :  { %v2819_v38 = vadd.f32 %v902_v36, %v894_v33 }
 0xd51   :  { %2496 = vtanh.f32 %v2819_v38  ;;  %v1009_v40 = vpop.permute.xlu1 %1008 }
 0xd52   :  { %v2822_v42 = vadd.f32 %v1009_v40, %v1001_v39 }
 0xd54   :  { %2498 = vtanh.f32 %v2822_v42 }
 0xd5b   :  { %v2497_v43 = vpop.eup %2496 }
 0xd5c   :  { %907 = vrot.lane.b32.xlu0 %v2497_v43, %s2597_s0 }
 0xd5e   :  { %v2499_v44 = vpop.eup %2498 }
 0xd5f   :  { %1014 = vrot.lane.b32.xlu1 %v2499_v44, %s2597_s0 }
 0xdce   :  { %v908_v45 = vpop.permute.xlu0 %907 }
 0xdcf   :  { %v910_v47 = vmul.f32 %v2493_v22, %v908_v45  ;;  %v1215_v22 = vrot.slane %v2822_v42, 7 }
 0xdd1   :  { %v1023_v48 = vrot.slane %v910_v47, 4  ;;  %v1015_v49 = vpop.permute.xlu1 %1014 }
 0xdd2   :  { %v1017_v50 = vmul.f32 %v2495_v24, %v1015_v49 }
 0xdd3   :  { %1024 = vrot.lane.b32.xlu1 %v1023_v48, %s2597_s0 }
 0xdd4   :  { %1019 = vrot.lane.b32.xlu0 %v1017_v50, %s2598_s24  ;;  %v1127_v51 = vrot.slane %v1017_v50, 4 }
 0xdd8   :  { %1128 = vrot.lane.b32.xlu0 %v1127_v51, %s2598_s24 }
 0xe45   :  { %v1025_v52 = vpop.permute.xlu1 %1024 }
 0xe46   :  { %v1020_v53 = vpop.permute.xlu0 %1019 }
 0xe47   :  { %v1027_v54 = vsel %vm62_vm1, %v1020_v53, %v1025_v52 }
 0xe48   :  { %v1029_v55 = vrot.slane %v1027_v54, 4 }
 0xe4a   :  { %v1129_v56 = vpop.permute.xlu0 %1128  ;;  %2182 = vmatmul.mubr.msk.f32.vlgmr.msra.gmra.mrb[8].mxu1 %vm167_vm2, %v1029_v55 }
 0xe4b   :  { %2193 = vmatmul.mubr.msk.f32.vlgmr.msra.gmra.mrb[10].mxu0 %vm62_vm1, %v1129_v56  ;;  %2395 = vmatpush3.bf16.msra.mxu1 %v2633_v6 }
 0xe4c   :  { %2383 = vmatpush3.bf16.msra.mxu0 %v2659_v32  ;;  %2396 = vmatprep.subr.bf16.mxu1 %v2593_v0 }
 0xe4d   :  { %2384 = vmatprep.subr.bf16.mxu0 %v2593_v0  ;;  %2211 = vmatprep.mubr.msk.f32.mxu0 %vm2594_vm0, %v2595_v1 }
 0xe4e   :  { %2222 = vmatprep.mubr.msk.f32.mxu1 %vm2594_vm0, %v2595_v1 }
 0xe4f   :  { %2398 = vmatpush3.bf16.msra.mxu1 %v2639_v9 }
 0xe50   :  { %2386 = vmatpush3.bf16.msra.mxu0 %v2662_v34  ;;  %2399 = vmatprep.subr.bf16.mxu1 %v2593_v0 }
 0xe51   :  { %2387 = vmatprep.subr.bf16.mxu0 %v2593_v0 }
 0xe54   :  { %2389 = vmatpush3.bf16.msra.mxu0 %v2666_v37 }
 0xe55   :  { %2390 = vmatprep.subr.bf16.mxu0 %v2593_v0 }
 0xe58   :  { %2392 = vmatpush3.bf16.msra.mxu0 %v2671_v41 }
 0xe59   :  { %2411 = vmatprep.subr.bf16.mxu0 %v2593_v0 }
 0xf1d   :  { %v1098_v57 = vpop.f32.mrb[8].mxu1 }
 0xf1e   :  { %v1099_v58 = vadd.f32 %v1098_v57, %v2696_v46  ;;  %v2183_v59 = vpop.f32.mrb[9].mxu1  ;;  %v1198_v60 = vpop.f32.mrb[10].mxu0 }
 0xf1f   :  { %v1203_v61 = vrot.slane %v1198_v60, 3  ;;  %v2194_v62 = vpop.f32.mrb[11].mxu0 }
 0xf20   :  { %v1896_v63 = vmul.f32 -1.442695, %v1099_v58 }
 0xf21   :  { %v1205_v2 = vadd.f32 %v1203_v61, %v2651_v14 }
 0xf22   :  { %2500 = vpow2.f32 %v1896_v63 }
 0xf23   :  { %v1899_v3 = vmul.f32 -1.442695, %v1205_v2 }
 0xf25   :  { %2502 = vpow2.f32 %v1899_v3 }
 0xf2c   :  { %v2501_v4 = vpop.eup %2500 }
 0xf2d   :  { %v1105_v5 = vadd.f32 1.0, %v2501_v4 }
 0xf2f   :  { %v2503_v7 = vpop.eup %2502  ;;  %2504 = vrcp.f32 %v1105_v5 }
 0xf30   :  { %v1209_v8 = vadd.f32 1.0, %v2503_v7 }
 0xf32   :  { %2506 = vrcp.f32 %v1209_v8 }
 0xf39   :  { %v2505_v10 = vpop.eup %2504 }
 0xf3a   :  { %v1108_v11 = vmul.f32 2.0, %v2505_v10  ;;  %v1110_v21 = vmul.f32 %v2505_v10, %v2819_v38 }
 0xf3c   :  { %v2507_v12 = vpop.eup %2506  ;;  %v1897_v13 = vadd.f32 -1.0, %v1108_v11 }
 0xf3d   :  { %v1212_v15 = vmul.f32 2.0, %v2507_v12  ;;  %v1217_v25 = vmul.f32 %v2507_v12, %v1215_v22 }
 0xf3e   :  { %1112 = vrot.lane.b32.xlu1 %v1897_v13, %s2597_s0 }
 0xf3f   :  { %v1900_v16 = vadd.f32 -1.0, %v1212_v15 }
 0xf41   :  { %1219 = vrot.lane.b32.xlu0 %v1900_v16, %s2597_s0 }
 0xfb0   :  { %v1113_v17 = vpop.permute.xlu1 %1112 }
 0xfb1   :  { %v1115_v18 = vmul.f32 %v2505_v10, %v1113_v17 }
 0xfb3   :  { %v1220_v19 = vpop.permute.xlu0 %1219  ;;  %1117 = vrot.lane.b32.xlu1 %v1115_v18, %s2598_s24 }
 0xfb4   :  { %v1222_v20 = vmul.f32 %v2507_v12, %v1220_v19 }
 0xfb6   :  { %1224 = vrot.lane.b32.xlu0 %v1222_v20, %s2598_s24 }
0x1025   :  { %v1118_v23 = vpop.permute.xlu1 %1117 }
0x1026   :  { %v2857_v24 = vadd.f32 %v1118_v23, %v1110_v21 }
0x1028   :  { %2508 = vtanh.f32 %v2857_v24  ;;  %v1225_v26 = vpop.permute.xlu0 %1224 }
0x1029   :  { %v2860_v27 = vadd.f32 %v1225_v26, %v1217_v25 }
0x102b   :  { %2510 = vtanh.f32 %v2860_v27  ;;  %v1431_v7 = vrot.slane %v2860_v27, 7 }
0x1032   :  { %v2509_v28 = vpop.eup %2508 }
0x1033   :  { %1123 = vrot.lane.b32.xlu1 %v2509_v28, %s2597_s0 }
0x1035   :  { %v2511_v29 = vpop.eup %2510 }
0x1036   :  { %1230 = vrot.lane.b32.xlu0 %v2511_v29, %s2597_s0 }
0x10a5   :  { %v1124_v30 = vpop.permute.xlu1 %1123 }
0x10a6   :  { %v1126_v31 = vmul.f32 %v2505_v10, %v1124_v30 }
0x10a8   :  { %v1239_v33 = vrot.slane %v1126_v31, 3  ;;  %v1231_v35 = vpop.permute.xlu0 %1230 }
0x10a9   :  { %v1233_v36 = vmul.f32 %v2507_v12, %v1231_v35 }
0x10aa   :  { %1240 = vrot.lane.b32.xlu0 %v1239_v33, %s2597_s0 }
0x10ab   :  { %1235 = vrot.lane.b32.xlu1 %v1233_v36, %s2598_s24  ;;  %v1343_v38 = vrot.slane %v1233_v36, 5 }
0x10af   :  { %1344 = vrot.lane.b32.xlu1 %v1343_v38, %s2598_s24 }
0x111c   :  { %v1241_v39 = vpop.permute.xlu0 %1240 }
0x111d   :  { %v1236_v40 = vpop.permute.xlu1 %1235 }
0x111e   :  { %v1243_v42 = vsel %vm62_vm1, %v1236_v40, %v1241_v39 }
0x111f   :  { %v1245_v43 = vrot.slane %v1243_v42, 5 }
0x1121   :  { %2212 = vmatmul.mubr.msk.f32.vlgmr.msra.gmra.mrb[12].mxu0 %vm167_vm2, %v1245_v43  ;;  %v1345_v44 = vpop.permute.xlu1 %1344 }
0x1122   :  { %2223 = vmatmul.mubr.msk.f32.vlgmr.msra.gmra.mrb[10].mxu1 %vm62_vm1, %v1345_v44  ;;  %2413 = vmatpush3.bf16.msra.mxu0 %v2633_v6 }
0x1123   :  { %2401 = vmatpush3.bf16.msra.mxu1 %v2659_v32  ;;  %2414 = vmatprep.subr.bf16.mxu0 %v2593_v0 }
0x1124   :  { %2402 = vmatprep.subr.bf16.mxu1 %v2593_v0  ;;  %2241 = vmatprep.mubr.msk.f32.mxu1 %vm2594_vm0, %v2595_v1 }
0x1125   :  { %2252 = vmatprep.mubr.msk.f32.mxu0 %vm2594_vm0, %v2595_v1 }
0x1126   :  { %2416 = vmatpush3.bf16.msra.mxu0 %v2639_v9 }
0x1127   :  { %2404 = vmatpush3.bf16.msra.mxu1 %v2662_v34  ;;  %2417 = vmatprep.subr.bf16.mxu0 %v2593_v0 }
0x1128   :  { %2405 = vmatprep.subr.bf16.mxu1 %v2593_v0 }
0x112b   :  { %2407 = vmatpush3.bf16.msra.mxu1 %v2666_v37 }
0x112c   :  { %2408 = vmatprep.subr.bf16.mxu1 %v2593_v0 }
0x112f   :  { %2410 = vmatpush3.bf16.msra.mxu1 %v2671_v41 }
0x1130   :  { %2429 = vmatprep.subr.bf16.mxu1 %v2593_v0 }
0x11f4   :  { %v1314_v6 = vpop.f32.mrb[12].mxu0 }
0x11f5   :  { %v1315_v45 = vadd.f32 %v1314_v6, %v2696_v46  ;;  %v2213_v47 = vpop.f32.mrb[13].mxu0  ;;  %v1414_v48 = vpop.f32.mrb[10].mxu1 }
0x11f6   :  { %v1419_v9 = vrot.slane %v1414_v48, 2  ;;  %v2224_v49 = vpop.f32.mrb[11].mxu1 }
0x11f7   :  { %v1902_v50 = vmul.f32 -1.442695, %v1315_v45 }
0x11f8   :  { %v1421_v51 = vadd.f32 %v1419_v9, %v2651_v14 }
0x11f9   :  { %2512 = vpow2.f32 %v1902_v50 }
0x11fa   :  { %v1905_v52 = vmul.f32 -1.442695, %v1421_v51 }
0x11fc   :  { %2514 = vpow2.f32 %v1905_v52 }
0x1203   :  { %v2513_v53 = vpop.eup %2512 }
0x1204   :  { %v1321_v54 = vadd.f32 1.0, %v2513_v53 }
0x1206   :  { %v2515_v55 = vpop.eup %2514  ;;  %2516 = vrcp.f32 %v1321_v54 }
0x1207   :  { %v1425_v56 = vadd.f32 1.0, %v2515_v55 }
0x1209   :  { %2518 = vrcp.f32 %v1425_v56 }
0x1210   :  { %v2517_v57 = vpop.eup %2516 }
0x1211   :  { %v1324_v58 = vmul.f32 2.0, %v2517_v57  ;;  %v1326_v5 = vmul.f32 %v2517_v57, %v2857_v24 }
0x1213   :  { %v2519_v59 = vpop.eup %2518  ;;  %v1903_v60 = vadd.f32 -1.0, %v1324_v58 }
0x1214   :  { %v1428_v61 = vmul.f32 2.0, %v2519_v59  ;;  %v1433_v11 = vmul.f32 %v2519_v59, %v1431_v7 }
0x1215   :  { %1328 = vrot.lane.b32.xlu0 %v1903_v60, %s2597_s0 }
0x1216   :  { %v1906_v62 = vadd.f32 -1.0, %v1428_v61 }
0x1218   :  { %1435 = vrot.lane.b32.xlu1 %v1906_v62, %s2597_s0 }
0x1287   :  { %v1329_v63 = vpop.permute.xlu0 %1328 }
0x1288   :  { %v1331_v2 = vmul.f32 %v2517_v57, %v1329_v63 }
0x128a   :  { %1333 = vrot.lane.b32.xlu0 %v1331_v2, %s2598_s24  ;;  %v1436_v3 = vpop.permute.xlu1 %1435 }
0x128b   :  { %v1438_v4 = vmul.f32 %v2519_v59, %v1436_v3 }
0x128d   :  { %1440 = vrot.lane.b32.xlu1 %v1438_v4, %s2598_s24 }
0x12fc   :  { %v1334_v8 = vpop.permute.xlu0 %1333 }
0x12fd   :  { %v2895_v10 = vadd.f32 %v1334_v8, %v1326_v5 }
0x12ff   :  { %2520 = vtanh.f32 %v2895_v10  ;;  %v1441_v12 = vpop.permute.xlu1 %1440 }
0x1300   :  { %v2898_v13 = vadd.f32 %v1441_v12, %v1433_v11 }
0x1302   :  { %2522 = vtanh.f32 %v2898_v13  ;;  %v1647_v49 = vrot.slane %v2898_v13, 7 }
0x1309   :  { %v2521_v15 = vpop.eup %2520 }
0x130a   :  { %1339 = vrot.lane.b32.xlu0 %v2521_v15, %s2597_s0 }
0x130c   :  { %v2523_v16 = vpop.eup %2522 }
0x130d   :  { %1446 = vrot.lane.b32.xlu1 %v2523_v16, %s2597_s0 }
0x137c   :  { %v1340_v17 = vpop.permute.xlu0 %1339 }
0x137d   :  { %v1342_v18 = vmul.f32 %v2517_v57, %v1340_v17 }
0x137f   :  { %v1455_v19 = vrot.slane %v1342_v18, 2  ;;  %v1447_v20 = vpop.permute.xlu1 %1446 }
0x1380   :  { %v1449_v21 = vmul.f32 %v2519_v59, %v1447_v20 }
0x1381   :  { %1456 = vrot.lane.b32.xlu1 %v1455_v19, %s2597_s0 }
0x1382   :  { %1451 = vrot.lane.b32.xlu0 %v1449_v21, %s2598_s24  ;;  %v1559_v22 = vrot.slane %v1449_v21, 6  ;;  %v43_v21 = vld [vmem:[#allocation2 + $0x70] sm:$0xff] }
0x1386   :  { %1560 = vrot.lane.b32.xlu0 %v1559_v22, %s2598_s24  ;;  %v44_v22 = vld [vmem:[#allocation2 + $0x78] sm:$0xff] }
0x13f3   :  { %v1457_v23 = vpop.permute.xlu1 %1456 }
0x13f4   :  { %v1452_v24 = vpop.permute.xlu0 %1451 }
0x13f5   :  { %v1459_v25 = vsel %vm62_vm1, %v1452_v24, %v1457_v23  ;;  %v45_v24 = vld [vmem:[#allocation2 + $0x80] sm:$0xff] }
0x13f6   :  { %v1461_v26 = vrot.slane %v1459_v25, 6  ;;  %v2433_v25 = vpack.c.bf16 %v45_v24, %v44_v22 }
0x13f8   :  { %v1561_v27 = vpop.permute.xlu0 %1560  ;;  %2242 = vmatmul.mubr.msk.f32.vlgmr.msra.gmra.mrb[12].mxu1 %vm167_vm2, %v1461_v26 }
0x13f9   :  { %2253 = vmatmul.mubr.msk.f32.vlgmr.msra.gmra.mrb[14].mxu0 %vm62_vm1, %v1561_v27  ;;  %2282 = vmatprep.mubr.msk.f32.mxu1 %vm2594_vm0, %v2595_v1 }
0x13fa   :  { %2419 = vmatpush3.bf16.msra.mxu0 %v2659_v32  ;;  %2271 = vmatprep.mubr.msk.f32.mxu0 %vm2594_vm0, %v2595_v1 }
0x13fb   :  { %2420 = vmatprep.subr.bf16.mxu0 %v2593_v0 }
0x13fe   :  { %2422 = vmatpush3.bf16.msra.mxu0 %v2662_v34 }
0x13ff   :  { %2423 = vmatprep.subr.bf16.mxu0 %v2593_v0 }
0x1402   :  { %2425 = vmatpush3.bf16.msra.mxu0 %v2666_v37 }
0x1403   :  { %2426 = vmatprep.subr.bf16.mxu0 %v2593_v0 }
0x1406   :  { %2428 = vmatpush3.bf16.msra.mxu0 %v2671_v41 }
0x14cb   :  { %v1530_v28 = vpop.f32.mrb[12].mxu1 }
0x14cc   :  { %v1531_v29 = vadd.f32 %v1530_v28, %v2696_v46  ;;  %v2243_v30 = vpop.f32.mrb[13].mxu1  ;;  %v1630_v32 = vpop.f32.mrb[14].mxu0 }
0x14cd   :  { %v1635_v31 = vrot.slane %v1630_v32, 1  ;;  %v2254_v33 = vpop.f32.mrb[15].mxu0  ;;  %v29_v30 = vld [vmem:[#allocation2 + $0x3] sm:$0x1] }
0x14ce   :  { %v1908_v1 = vmul.f32 -1.442695, %v1531_v29 }
0x14cf   :  { %v1637_v35 = vadd.f32 %v1635_v31, %v2651_v14 }
0x14d0   :  { %2524 = vpow2.f32 %v1908_v1 }
0x14d1   :  { %v1911_v34 = vmul.f32 -1.442695, %v1637_v35 }
0x14d3   :  { %2526 = vpow2.f32 %v1911_v34 }
0x14da   :  { %v2525_v36 = vpop.eup %2524 }
0x14db   :  { %v1537_v38 = vadd.f32 1.0, %v2525_v36 }
0x14dd   :  { %v2527_v37 = vpop.eup %2526  ;;  %2528 = vrcp.f32 %v1537_v38 }
0x14de   :  { %v1641_v39 = vadd.f32 1.0, %v2527_v37 }
0x14e0   :  { %2530 = vrcp.f32 %v1641_v39 }
0x14e7   :  { %v2529_v41 = vpop.eup %2528 }
0x14e8   :  { %v1540_v40 = vmul.f32 2.0, %v2529_v41  ;;  %v1542_v9 = vmul.f32 %v2529_v41, %v2895_v10 }
0x14ea   :  { %v2531_v42 = vpop.eup %2530  ;;  %v1909_v43 = vadd.f32 -1.0, %v1540_v40 }
0x14eb   :  { %v1644_v44 = vmul.f32 2.0, %v2531_v42  ;;  %v1649_v52 = vmul.f32 %v2531_v42, %v1647_v49 }
0x14ec   :  { %1544 = vrot.lane.b32.xlu1 %v1909_v43, %s2597_s0 }
0x14ed   :  { %v1912_v6 = vadd.f32 -1.0, %v1644_v44 }
0x14ef   :  { %1651 = vrot.lane.b32.xlu0 %v1912_v6, %s2597_s0 }
0x155e   :  { %v1545_v14 = vpop.permute.xlu1 %1544 }
0x155f   :  { %v1547_v45 = vmul.f32 %v2529_v41, %v1545_v14 }
0x1561   :  { %v1652_v47 = vpop.permute.xlu0 %1651  ;;  %1549 = vrot.lane.b32.xlu1 %v1547_v45, %s2598_s24 }
0x1562   :  { %v1654_v48 = vmul.f32 %v2531_v42, %v1652_v47 }
0x1564   :  { %1656 = vrot.lane.b32.xlu0 %v1654_v48, %s2598_s24 }
0x15d3   :  { %v1550_v50 = vpop.permute.xlu1 %1549 }
0x15d4   :  { %v1552_v51 = vadd.f32 %v1550_v50, %v1542_v9 }
0x15d6   :  { %2532 = vtanh.f32 %v1552_v51  ;;  %v1657_v53 = vpop.permute.xlu0 %1656 }
0x15d7   :  { %v1659_v54 = vadd.f32 %v1657_v53, %v1649_v52 }
0x15d9   :  { %2534 = vtanh.f32 %v1659_v54 }
0x15e0   :  { %v2533_v55 = vpop.eup %2532 }
0x15e1   :  { %1555 = vrot.lane.b32.xlu1 %v2533_v55, %s2597_s0 }
0x15e3   :  { %v2535_v56 = vpop.eup %2534 }
0x15e4   :  { %1662 = vrot.lane.b32.xlu0 %v2535_v56, %s2597_s0 }
0x1653   :  { %v1556_v57 = vpop.permute.xlu1 %1555 }
0x1654   :  { %v1558_v58 = vmul.f32 %v2529_v41, %v1556_v57 }
0x1656   :  { %v1671_v59 = vrot.slane %v1558_v58, 1  ;;  %v1663_v60 = vpop.permute.xlu0 %1662 }
0x1657   :  { %v1665_v61 = vmul.f32 %v2531_v42, %v1663_v60 }
0x1658   :  { %1672 = vrot.lane.b32.xlu0 %v1671_v59, %s2597_s0 }
0x1659   :  { %1667 = vrot.lane.b32.xlu1 %v1665_v61, %s2598_s24 }
0x16ca   :  { %v1673_v62 = vpop.permute.xlu0 %1672 }
0x16cb   :  { %v1668_v63 = vpop.permute.xlu1 %1667 }
0x16cc   :  { %v1675_v2 = vsel %vm62_vm1, %v1668_v63, %v1673_v62 }
0x16cd   :  { %v1677_v3 = vrot.slane %v1675_v2, 7 }
0x16cf   :  { %2272 = vmatmul.mubr.msk.f32.vlgmr.msra.gmra.mrb[16].mxu0 %vm167_vm2, %v1677_v3 }
0x17a2   :  { %v1746_v4 = vpop.f32.mrb[16].mxu0 }
0x17a3   :  { %v1747_v5 = vadd.f32 %v1746_v4, %v2696_v46  ;;  %v2273_v7 = vpop.f32.mrb[17].mxu0  ;;  %v42_v46 = vld [vmem:[#allocation2 + $0x68] sm:$0xff] }
0x17a4   :  { %v2430_v23 = vpack.c.bf16 %v43_v21, %v42_v46 }
0x17a5   :  { %v1914_v8 = vmul.f32 -1.442695, %v1747_v5 }
0x17a6   :  { %2431 = vmatpush3.bf16.msra.mxu1 %v2430_v23 }
0x17a7   :  { %2536 = vpow2.f32 %v1914_v8  ;;  %2432 = vmatprep.subr.bf16.mxu1 %v2593_v0 }
0x17aa   :  { %2434 = vmatpush3.bf16.msra.mxu1 %v2433_v25 }
0x17b1   :  { %v2537_v10 = vpop.eup %2536 }
0x17b2   :  { %v1753_v11 = vadd.f32 1.0, %v2537_v10 }
0x17b4   :  { %2538 = vrcp.f32 %v1753_v11 }
0x17be   :  { %v2539_v12 = vpop.eup %2538 }
0x17bf   :  { %v1756_v13 = vmul.f32 2.0, %v2539_v12  ;;  %v1758_v18 = vmul.f32 %v2539_v12, %v1552_v51 }
0x17c1   :  { %v1915_v15 = vadd.f32 -1.0, %v1756_v13 }
0x17c3   :  { %1760 = vrot.lane.b32.xlu1 %v1915_v15, %s2597_s0 }
0x1835   :  { %v1761_v16 = vpop.permute.xlu1 %1760 }
0x1836   :  { %v1763_v17 = vmul.f32 %v2539_v12, %v1761_v16 }
0x1838   :  { %1765 = vrot.lane.b32.xlu0 %v1763_v17, %s2598_s24 }
0x18aa   :  { %v1766_v19 = vpop.permute.xlu0 %1765 }
0x18ab   :  { %v1768_v20 = vadd.f32 %v1766_v19, %v1758_v18 }
0x18ad   :  { %2540 = vtanh.f32 %v1768_v20 }
0x18b7   :  { %v2541_v26 = vpop.eup %2540 }
0x18b8   :  { %1771 = vrot.lane.b32.xlu1 %v2541_v26, %s2597_s0 }
0x192a   :  { %v1772_v27 = vpop.permute.xlu1 %1771 }
0x192b   :  { %v1774_v28 = vmul.f32 %v2539_v12, %v1772_v27 }
0x192d   :  { %1776 = vrot.lane.b32.xlu0 %v1774_v28, %s2598_s24 }
0x199f   :  { %v1777_v29 = vpop.permute.xlu0 %1776 }
0x19a0   :  { %2283 = vmatmul.mubr.msk.f32.vlgmr.msra.gmra.mrb[14].mxu1 %vm62_vm1, %v1777_v29 }
0x1a73   :  { %v1846_v32 = vpop.f32.mrb[14].mxu1 }
0x1a74   :  { %v1847_v31 = vadd.f32 %v1846_v32, %v29_v30  ;;  %v2284_v33 = vpop.f32.mrb[15].mxu1 }
0x1a76   :  { %1851 = vst.msk [vmem:[#allocation5] sm:$0x1] %vm1850_vm3, %v1847_v31 }
0x1a77   :  { %2575 = shalt.err (!%p2572_p12)
}
0x1a78   :  { %s2576_s3 = scalar_lea.hbm %s2955_s2, 16 }
0x1a79   :  { %p2577_p13 = scmp.ne.s32.totalorder %s2955_s2, %s2576_s3  ;;  %p2580_p0 = scmp.lt.u32.totalorder %s2576_s3, %s2955_s2 }
0x1a7b   :  { %p2582_p1 = pnand %p2580_p0, %p2577_p13 }
0x1a7d   :  { %2585 = shalt.err (!%p2582_p1)
}
0x1a7e   :  { %1861 = dma.vmem_to_hbm [thread:$0]  %s1859_s26, 16, %s2955_s2, [#allocation4]  }
0x1a7f   :  { %2588 = dma.done.wait [#allocation4], 16  }
0x1a80   :  { %2589 = vsyncadd [#allocation4], 4294967280 }
0x1a81   :  { %1865 = vsyncpa [#allocation3], 1 }
0x1a82   :  { %1866 = vsyncpa [#allocation4], 1 }

</bundles_post_ra>
